<compile_context>
chip_gen: v7x
topology: tpu7x:2x2x1
jax: 0.10.0
libtpu: 0.0.40
codegen_flags: <defaults>
</compile_context>

<pallas_src>
import functools

import jax
import jax.numpy as jnp
from jax.experimental import pallas as pl
from jax.experimental.pallas import tpu as pltpu

KSIZE = (3, 5, 3)          # (kD, kH, kW)
STRIDE = (2, 1, 2)
BN_EPS = 0.01              # matches nn.BatchNorm3d(in_size, eps=0.01)

_LANE = 128
_VMEM_LIMIT = 32 * 1024 * 1024          # safe on v5e/v6e/v7x
_IN_BLOCK_TARGET = 2 * 1024 * 1024      # per-step patch block target (bytes)


# ----------------------------------------------------------------------------
# Stage 1: conv (5 accumulating MXU matmuls) + ReLU, per-step BN statistics,
#          tree-reduced maxpool.  One grid step handles `S` (n, do)-slabs.
# ----------------------------------------------------------------------------
def _s4_stage1_kernel(p_ref, w_ref, conv_ref, pool_ref, stats_ref, *, wo, out_w):
    # p_ref    : (S, 9*C, HWpad) bf16  window-major im2col of the 9 stride-2
    #                                  (dz, dx) taps, full H range, per slab.
    # w_ref    : (5, C, 9*C)     bf16  one (C, 9C) weight matrix per H tap.
    # conv_ref : (S, C, HWpad)   bf16  relu(conv), pre-BN (cols [0, out_w) valid)
    # pool_ref : (S, C, HWpad)   bf16  relu(maxpool)      (cols [0, out_w) valid)
    # stats_ref: (C, 2)          f32   per-step per-channel [sum, sum_sq].
    n_slab, kc, _ = p_ref.shape
    kh = w_ref.shape[0]
    c = conv_ref.shape[1]
    n_tap = kc // c            # 9

    sum_acc = jnp.zeros((c, 1), jnp.float32)
    sq_acc = jnp.zeros((c, 1), jnp.float32)

    for s in range(n_slab):
        patch = p_ref[s]                                        # (9C, HWpad)

        # Conv3d: full-H matmuls, stride-1 H taps generated as shifted lane
        # slices of the (C, HWpad) results (C rows -> cheap relayout).
        conv = None
        for dy in range(kh):
            q = jnp.dot(w_ref[dy], patch,
                        preferred_element_type=jnp.float32)      # (C, HWpad) f32
            q = q[:, dy * wo:dy * wo + out_w]                    # h = ho + dy
            conv = q if conv is None else conv + q
        conv = jnp.maximum(conv, 0.0)                            # ReLU before BN
        conv_ref[s, :, 0:out_w] = conv.astype(conv_ref.dtype)

        # Per-step BN statistics over the valid columns only.
        # TODO(synk): E[x^2]-E[x]^2 in f32 can cancel for very large M; switch
        # to a shifted / Welford accumulation if tighter accuracy is needed.
        sum_acc = sum_acc + jnp.sum(conv, axis=1, keepdims=True)
        sq_acc = sq_acc + jnp.sum(conv * conv, axis=1, keepdims=True)

        # MaxPool3d: pairwise tree over the 9 (dz, dx) taps (bf16, exact),
        # then max over the 5 shifted H taps in f32.
        taps = [p_ref[s, k * c:(k + 1) * c, :] for k in range(n_tap)]
        while len(taps) > 1:
            nxt = [jnp.maximum(taps[2 * i], taps[2 * i + 1])
                   for i in range(len(taps) // 2)]
            if len(taps) % 2:
                nxt.append(taps[-1])
            taps = nxt
        tmax = taps[0].astype(jnp.float32)                       # (C, HWpad)
        pool = None
        for dy in range(kh):
            sl = tmax[:, dy * wo:dy * wo + out_w]
            pool = sl if pool is None else jnp.maximum(pool, sl)
        pool_ref[s, :, 0:out_w] = jnp.maximum(pool, 0.0).astype(pool_ref.dtype)

    # Single (C, 2) store per grid step.
    stats_ref[...] = jnp.concatenate([sum_acc, sq_acc], axis=1)


# ----------------------------------------------------------------------------
# Stage 2: folded BatchNorm scale/shift + final ReLU on the conv branch.
# ----------------------------------------------------------------------------
def _s4_stage2_kernel(conv_ref, scale_ref, shift_ref, out_ref):
    # conv_ref: (S, C, HWpad) bf16; scale/shift: (C, 1) f32; out_ref: (S, C, HWpad) f32
    d1 = conv_ref[...].astype(jnp.float32) * scale_ref[...] + shift_ref[...]
    out_ref[...] = jnp.maximum(d1, 0.0)


def _extract_patches_9x(x_bf16):
    """(N,C,D,H,W) bf16 -> (N*Do, 9*C, H*Wo) bf16, keeping the full H range.

    Row = (dz*3 + dx)*C + ci, column = h*Wo + wo, slab = n*Do + do.  Only the
    9 stride-2 (dz, dx) taps are materialized (9x instead of 45x im2col); the
    5 stride-1 H taps are generated inside the kernel.
    """
    n, c, d, h, w = x_bf16.shape
    kd, _, kw = KSIZE
    sd, _, sw = STRIDE
    do = (d - kd) // sd + 1
    wo = (w - kw) // sw + 1
    taps = []
    for dz in range(kd):
        for dx in range(kw):
            taps.append(x_bf16[:, :, dz:dz + sd * do:sd, :, dx:dx + sw * wo:sw])
    p = jnp.stack(taps, axis=0)                       # (9, N, C, Do, H, Wo)
    p = jnp.transpose(p, (1, 3, 0, 2, 4, 5))          # (N, Do, 9, C, H, Wo)
    return p.reshape(n * do, kd * kw * c, h * wo), (do, wo)


@functools.partial(jax.jit, static_argnames=("slabs_per_step",))
def s4_forward(x, conv_w, gamma, beta, *, slabs_per_step=None):
    """x: (N,C,D,H,W) f32; conv_w: (C,C,3,5,3); returns (N, 2C, Do, Ho, Wo) f32.

    Training-mode BatchNorm (batch statistics).  The streamed operands are
    bf16 (deliberate perf choice), so results match an f32 PyTorch S4 only up
    to bf16 rounding of inputs / weights / the pre-BN intermediate.
    """
    n, c, d, h, w = x.shape
    kd, kh, kw = KSIZE
    assert d >= kd and h >= kh and w >= kw, "input too small for kernel (3,5,3)"
    do = (d - kd) // STRIDE[0] + 1
    ho = h - kh + 1
    wo = (w - kw) // STRIDE[2] + 1
    out_w = ho * wo                         # valid output columns per slab
    hw = h * wo                             # full-H columns per slab
    hwpad = ((hw + _LANE - 1) // _LANE) * _LANE
    ndo = n * do
    kc = kd * kw * c                        # 9*C patch rows

    # Cast x to bf16 *before* extracting the taps (halves im2col HBM traffic).
    patches, _ = _extract_patches_9x(x.astype(jnp.bfloat16))

    if slabs_per_step is None:
        slab_bytes = kc * hwpad * 2
        slabs_per_step = max(1, min(8, ndo, _IN_BLOCK_TARGET // slab_bytes))
    s_per = slabs_per_step
    num_steps = pl.cdiv(ndo, s_per)
    ndo_pad = num_steps * s_per

    # Padded slabs / columns are zeros: they contribute nothing to BN sums and
    # are sliced off in the epilogue.
    patches = jnp.pad(patches, ((0, ndo_pad - ndo), (0, 0), (0, hwpad - hw)))

    # (5, C, 9*C): one (C, 9C) weight matrix per stride-1 H tap; column order
    # (dz*3 + dx)*C + ci matches the patch row order.
    w5 = jnp.transpose(conv_w, (3, 0, 2, 4, 1)).reshape(kh, c, kc)
    w5 = w5.astype(jnp.bfloat16)

    cparams = pltpu.CompilerParams(
        dimension_semantics=("parallel",),
        vmem_limit_bytes=_VMEM_LIMIT)

    conv_pre, pool, stats = pl.pallas_call(
        functools.partial(_s4_stage1_kernel, wo=wo, out_w=out_w),
        out_shape=(
            jax.ShapeDtypeStruct((ndo_pad, c, hwpad), jnp.bfloat16),
            jax.ShapeDtypeStruct((ndo_pad, c, hwpad), jnp.bfloat16),
            jax.ShapeDtypeStruct((num_steps, c, 2), jnp.float32),
        ),
        grid=(num_steps,),
        in_specs=[
            pl.BlockSpec((s_per, kc, hwpad), lambda i: (i, 0, 0)),
            pl.BlockSpec((kh, c, kc), lambda i: (0, 0, 0)),
        ],
        out_specs=(
            pl.BlockSpec((s_per, c, hwpad), lambda i: (i, 0, 0)),
            pl.BlockSpec((s_per, c, hwpad), lambda i: (i, 0, 0)),
            pl.BlockSpec((None, c, 2), lambda i: (i, 0, 0)),
        ),
        compiler_params=cparams,
    )(patches, w5)

    # Global (training-mode) BatchNorm statistics over all valid positions.
    m_total = jnp.float32(n * do * ho * wo)
    s_tot = jnp.sum(stats, axis=0)                       # (C, 2)
    mean = s_tot[:, 0] / m_total
    var = jnp.maximum(s_tot[:, 1] / m_total - mean * mean, 0.0)  # biased var
    inv = jax.lax.rsqrt(var + BN_EPS)
    gamma = gamma.astype(jnp.float32)
    beta = beta.astype(jnp.float32)
    scale = (gamma * inv).reshape(c, 1)
    shift = (beta - mean * gamma * inv).reshape(c, 1)

    d1 = pl.pallas_call(
        _s4_stage2_kernel,
        out_shape=jax.ShapeDtypeStruct((ndo_pad, c, hwpad), jnp.float32),
        grid=(num_steps,),
        in_specs=[
            pl.BlockSpec((s_per, c, hwpad), lambda i: (i, 0, 0)),
            pl.BlockSpec((c, 1), lambda i: (0, 0)),
            pl.BlockSpec((c, 1), lambda i: (0, 0)),
        ],
        out_specs=pl.BlockSpec((s_per, c, hwpad), lambda i: (i, 0, 0)),
        compiler_params=cparams,
    )(conv_pre, scale, shift)

    # Epilogue: one fused XLA pass doing slice + concat + cast + NCDHW layout.
    d1 = d1[:ndo, :, :out_w]                             # (N*Do, C, Ho*Wo) f32
    d2 = pool[:ndo, :, :out_w].astype(jnp.float32)       # relu(pool), exact in bf16
    out = jnp.concatenate([d1, d2], axis=1)              # (N*Do, 2C, Ho*Wo)
    out = out.reshape(n, do, 2 * c, ho, wo)
    return jnp.transpose(out, (0, 2, 1, 3, 4))           # (N, 2C, Do, Ho, Wo)


def s4_reference(x, conv_w, gamma, beta):
    """Pure-JAX reference (Conv3d -> ReLU -> BN(train) ; MaxPool3d ; relu(cat))."""
    conv = jax.lax.conv_general_dilated(
        x, conv_w, window_strides=STRIDE, padding="VALID",
        dimension_numbers=("NCDHW", "OIDHW", "NCDHW"))
    conv = jnp.maximum(conv, 0.0)
    axes = (0, 2, 3, 4)
    mean = jnp.mean(conv, axis=axes, keepdims=True)
    var = jnp.mean((conv - mean) ** 2, axis=axes, keepdims=True)
    d1 = (conv - mean) * jax.lax.rsqrt(var + BN_EPS)
    d1 = d1 * gamma.reshape(1, -1, 1, 1, 1) + beta.reshape(1, -1, 1, 1, 1)
    d2 = jax.lax.reduce_window(x, -jnp.inf, jax.lax.max,
                               (1, 1) + KSIZE, (1, 1) + STRIDE, "VALID")
    return jnp.maximum(jnp.concatenate([d1, d2], axis=1), 0.0)


if __name__ == "__main__":
    key = jax.random.PRNGKey(0)
    kx, kw_ = jax.random.split(key)

    # Small shapes consistent with the module: need D>=3, H>=5, W>=3.
    N, C, D, H, W = 2, 4, 9, 9, 9
    x = jax.random.normal(kx, (N, C, D, H, W), dtype=jnp.float32)

    # Conv3d weight (bias=False default), BatchNorm3d affine defaults.
    fan_in = C * KSIZE[0] * KSIZE[1] * KSIZE[2]
    conv_w = jax.random.normal(kw_, (C, C) + KSIZE, dtype=jnp.float32) / jnp.sqrt(
        jnp.float32(fan_in))
    gamma = jnp.ones((C,), jnp.float32)
    beta = jnp.zeros((C,), jnp.float32)

    # slabs_per_step=3 forces the multi-step + slab-padding path on this tiny
    # example; the auto-sized default targets realistic shapes.
    out = s4_forward(x, conv_w, gamma, beta, slabs_per_step=3)
    out = jax.block_until_ready(out)

    # Do=(9-3)//2+1=4, Ho=(9-5)//1+1=5, Wo=(9-3)//2+1=4
    assert out.shape == (N, 2 * C, 4, 5, 4), out.shape

    # Numerical check against a pure-JAX reference evaluated on the same
    # bf16-rounded inputs/weights (bf16 streaming + bf16 pre-BN intermediate
    # is a deliberate perf choice, hence the 2e-2 envelope).
    xq = x.astype(jnp.bfloat16).astype(jnp.float32)
    wq = conv_w.astype(jnp.bfloat16).astype(jnp.float32)
    ref = jax.jit(s4_reference)(xq, wq, gamma, beta)
    err = float(jnp.max(jnp.abs(out - ref)))
    assert bool(jnp.allclose(out, ref, atol=2e-2, rtol=2e-2)), err

    print("KERNEL_OK")
</pallas_src>

<mosaic_0001>
module attributes {stable_mosaic.version = 11 : i64} {
  func.func @_s4_stage1_kernel(%arg0: i32, %arg1: memref<3x36x128xbf16, #tpu.memory_space<vmem>>, %arg2: memref<5x4x36xbf16, #tpu.memory_space<vmem>>, %arg3: memref<3x4x128xbf16, #tpu.memory_space<vmem>>, %arg4: memref<3x4x128xbf16, #tpu.memory_space<vmem>>, %arg5: memref<1x4x2xf32, #tpu.memory_space<vmem>>) attributes {dimension_semantics = [#tpu.dimension_semantics<parallel>], iteration_bounds = array<i64: 3>, scalar_prefetch = 0 : i64, scratch_operands = 0 : i64, tpu.core_type = #tpu.core_type<tc>, window_params = [{transform_indices = @transform_0, window_bounds = array<i64: 3, 36, 128>}, {pipeline_mode = #tpu.pipeline_mode<synchronous>, transform_indices = @transform_1, window_bounds = array<i64: 5, 4, 36>}, {transform_indices = @transform_2, window_bounds = array<i64: 3, 4, 128>}, {transform_indices = @transform_3, window_bounds = array<i64: 3, 4, 128>}, {transform_indices = @transform_4, window_bounds = array<i64: 1, 4, 2>}]} {
    %cst = arith.constant 0.000000e+00 : f32
    %0 = vector.broadcast %cst : f32 to vector<4x1xf32>
    %cst_0 = arith.constant 0.000000e+00 : f32
    %1 = vector.broadcast %cst_0 : f32 to vector<4x1xf32>
    %c0 = arith.constant 0 : index
    %c0_1 = arith.constant 0 : index
    %c0_2 = arith.constant 0 : index
    %2 = vector.load %arg1[%c0, %c0_1, %c0_2] : memref<3x36x128xbf16, #tpu.memory_space<vmem>>, vector<1x36x128xbf16>
    %3 = vector.shape_cast %2 : vector<1x36x128xbf16> to vector<36x128xbf16>
    %c0_3 = arith.constant 0 : index
    %c0_4 = arith.constant 0 : index
    %c0_5 = arith.constant 0 : index
    %4 = vector.load %arg2[%c0_3, %c0_4, %c0_5] : memref<5x4x36xbf16, #tpu.memory_space<vmem>>, vector<1x4x36xbf16>
    %5 = vector.shape_cast %4 : vector<1x4x36xbf16> to vector<4x36xbf16>
    %cst_6 = arith.constant dense<0.000000e+00> : vector<4x128xf32>
    %6 = tpu.matmul %5, %3, %cst_6 {dimension_numbers = #tpu.dot_dimension_numbers<[1], [0], [0], [1], [0, 0, 1, 1], [], []>} : vector<4x36xbf16>, vector<36x128xbf16>, vector<4x128xf32> -> vector<4x128xf32>
    %7 = vector.extract_strided_slice %6 {offsets = [0, 0], sizes = [4, 20], strides = [1, 1]} : vector<4x128xf32> to vector<4x20xf32>
    %c1 = arith.constant 1 : index
    %c0_7 = arith.constant 0 : index
    %c0_8 = arith.constant 0 : index
    %8 = vector.load %arg2[%c1, %c0_7, %c0_8] : memref<5x4x36xbf16, #tpu.memory_space<vmem>>, vector<1x4x36xbf16>
    %9 = vector.shape_cast %8 : vector<1x4x36xbf16> to vector<4x36xbf16>
    %cst_9 = arith.constant dense<0.000000e+00> : vector<4x128xf32>
    %10 = tpu.matmul %9, %3, %cst_9 {dimension_numbers = #tpu.dot_dimension_numbers<[1], [0], [0], [1], [0, 0, 1, 1], [], []>} : vector<4x36xbf16>, vector<36x128xbf16>, vector<4x128xf32> -> vector<4x128xf32>
    %11 = vector.extract_strided_slice %10 {offsets = [0, 4], sizes = [4, 20], strides = [1, 1]} : vector<4x128xf32> to vector<4x20xf32>
    %12 = arith.addf %7, %11 : vector<4x20xf32>
    %c2 = arith.constant 2 : index
    %c0_10 = arith.constant 0 : index
    %c0_11 = arith.constant 0 : index
    %13 = vector.load %arg2[%c2, %c0_10, %c0_11] : memref<5x4x36xbf16, #tpu.memory_space<vmem>>, vector<1x4x36xbf16>
    %14 = vector.shape_cast %13 : vector<1x4x36xbf16> to vector<4x36xbf16>
    %cst_12 = arith.constant dense<0.000000e+00> : vector<4x128xf32>
    %15 = tpu.matmul %14, %3, %cst_12 {dimension_numbers = #tpu.dot_dimension_numbers<[1], [0], [0], [1], [0, 0, 1, 1], [], []>} : vector<4x36xbf16>, vector<36x128xbf16>, vector<4x128xf32> -> vector<4x128xf32>
    %16 = vector.extract_strided_slice %15 {offsets = [0, 8], sizes = [4, 20], strides = [1, 1]} : vector<4x128xf32> to vector<4x20xf32>
    %17 = arith.addf %12, %16 : vector<4x20xf32>
    %c3 = arith.constant 3 : index
    %c0_13 = arith.constant 0 : index
    %c0_14 = arith.constant 0 : index
    %18 = vector.load %arg2[%c3, %c0_13, %c0_14] : memref<5x4x36xbf16, #tpu.memory_space<vmem>>, vector<1x4x36xbf16>
    %19 = vector.shape_cast %18 : vector<1x4x36xbf16> to vector<4x36xbf16>
    %cst_15 = arith.constant dense<0.000000e+00> : vector<4x128xf32>
    %20 = tpu.matmul %19, %3, %cst_15 {dimension_numbers = #tpu.dot_dimension_numbers<[1], [0], [0], [1], [0, 0, 1, 1], [], []>} : vector<4x36xbf16>, vector<36x128xbf16>, vector<4x128xf32> -> vector<4x128xf32>
    %21 = vector.extract_strided_slice %20 {offsets = [0, 12], sizes = [4, 20], strides = [1, 1]} : vector<4x128xf32> to vector<4x20xf32>
    %22 = arith.addf %17, %21 : vector<4x20xf32>
    %c4 = arith.constant 4 : index
    %c0_16 = arith.constant 0 : index
    %c0_17 = arith.constant 0 : index
    %23 = vector.load %arg2[%c4, %c0_16, %c0_17] : memref<5x4x36xbf16, #tpu.memory_space<vmem>>, vector<1x4x36xbf16>
    %24 = vector.shape_cast %23 : vector<1x4x36xbf16> to vector<4x36xbf16>
    %cst_18 = arith.constant dense<0.000000e+00> : vector<4x128xf32>
    %25 = tpu.matmul %24, %3, %cst_18 {dimension_numbers = #tpu.dot_dimension_numbers<[1], [0], [0], [1], [0, 0, 1, 1], [], []>} : vector<4x36xbf16>, vector<36x128xbf16>, vector<4x128xf32> -> vector<4x128xf32>
    %26 = vector.extract_strided_slice %25 {offsets = [0, 16], sizes = [4, 20], strides = [1, 1]} : vector<4x128xf32> to vector<4x20xf32>
    %27 = arith.addf %22, %26 : vector<4x20xf32>
    %cst_19 = arith.constant 0.000000e+00 : f32
    %28 = vector.broadcast %cst_19 : f32 to vector<4x20xf32>
    %29 = arith.maximumf %27, %28 : vector<4x20xf32>
    %30 = arith.truncf %29 : vector<4x20xf32> to vector<4x20xbf16>
    %c0_20 = arith.constant 0 : index
    %c0_21 = arith.constant 0 : index
    %c0_22 = arith.constant 0 : index
    %31 = vector.load %arg3[%c0_20, %c0_21, %c0_22] : memref<3x4x128xbf16, #tpu.memory_space<vmem>>, vector<1x4x20xbf16>
    %32 = vector.shape_cast %31 : vector<1x4x20xbf16> to vector<4x20xbf16>
    %33 = vector.shape_cast %30 : vector<4x20xbf16> to vector<1x4x20xbf16>
    tpu.vector_store %arg3[%c0_20, %c0_21, %c0_22], %33 {strides = array<i32>} : memref<3x4x128xbf16, #tpu.memory_space<vmem>>, vector<1x4x20xbf16>,
    %cst_23 = arith.constant dense<0.000000e+00> : vector<4xf32>
    %34 = vector.multi_reduction <add>, %29, %cst_23 [1] : vector<4x20xf32> to vector<4xf32>
    %35 = vector.shape_cast %34 : vector<4xf32> to vector<4x1xf32>
    %36 = arith.addf %0, %35 : vector<4x1xf32>
    %37 = arith.mulf %29, %29 : vector<4x20xf32>
    %cst_24 = arith.constant dense<0.000000e+00> : vector<4xf32>
    %38 = vector.multi_reduction <add>, %37, %cst_24 [1] : vector<4x20xf32> to vector<4xf32>
    %39 = vector.shape_cast %38 : vector<4xf32> to vector<4x1xf32>
    %40 = arith.addf %1, %39 : vector<4x1xf32>
    %c0_25 = arith.constant 0 : index
    %c0_26 = arith.constant 0 : index
    %c0_27 = arith.constant 0 : index
    %41 = vector.load %arg1[%c0_25, %c0_26, %c0_27] : memref<3x36x128xbf16, #tpu.memory_space<vmem>>, vector<1x4x128xbf16>
    %42 = vector.shape_cast %41 : vector<1x4x128xbf16> to vector<4x128xbf16>
    %c0_28 = arith.constant 0 : index
    %c4_29 = arith.constant 4 : index
    %c0_30 = arith.constant 0 : index
    %43 = vector.load %arg1[%c0_28, %c4_29, %c0_30] : memref<3x36x128xbf16, #tpu.memory_space<vmem>>, vector<1x4x128xbf16>
    %44 = vector.shape_cast %43 : vector<1x4x128xbf16> to vector<4x128xbf16>
    %c0_31 = arith.constant 0 : index
    %c8 = arith.constant 8 : index
    %c0_32 = arith.constant 0 : index
    %45 = vector.load %arg1[%c0_31, %c8, %c0_32] : memref<3x36x128xbf16, #tpu.memory_space<vmem>>, vector<1x4x128xbf16>
    %46 = vector.shape_cast %45 : vector<1x4x128xbf16> to vector<4x128xbf16>
    %c0_33 = arith.constant 0 : index
    %c12 = arith.constant 12 : index
    %c0_34 = arith.constant 0 : index
    %47 = vector.load %arg1[%c0_33, %c12, %c0_34] : memref<3x36x128xbf16, #tpu.memory_space<vmem>>, vector<1x4x128xbf16>
    %48 = vector.shape_cast %47 : vector<1x4x128xbf16> to vector<4x128xbf16>
    %c0_35 = arith.constant 0 : index
    %c16 = arith.constant 16 : index
    %c0_36 = arith.constant 0 : index
    %49 = vector.load %arg1[%c0_35, %c16, %c0_36] : memref<3x36x128xbf16, #tpu.memory_space<vmem>>, vector<1x4x128xbf16>
    %50 = vector.shape_cast %49 : vector<1x4x128xbf16> to vector<4x128xbf16>
    %c0_37 = arith.constant 0 : index
    %c20 = arith.constant 20 : index
    %c0_38 = arith.constant 0 : index
    %51 = vector.load %arg1[%c0_37, %c20, %c0_38] : memref<3x36x128xbf16, #tpu.memory_space<vmem>>, vector<1x4x128xbf16>
    %52 = vector.shape_cast %51 : vector<1x4x128xbf16> to vector<4x128xbf16>
    %c0_39 = arith.constant 0 : index
    %c24 = arith.constant 24 : index
    %c0_40 = arith.constant 0 : index
    %53 = vector.load %arg1[%c0_39, %c24, %c0_40] : memref<3x36x128xbf16, #tpu.memory_space<vmem>>, vector<1x4x128xbf16>
    %54 = vector.shape_cast %53 : vector<1x4x128xbf16> to vector<4x128xbf16>
    %c0_41 = arith.constant 0 : index
    %c28 = arith.constant 28 : index
    %c0_42 = arith.constant 0 : index
    %55 = vector.load %arg1[%c0_41, %c28, %c0_42] : memref<3x36x128xbf16, #tpu.memory_space<vmem>>, vector<1x4x128xbf16>
    %56 = vector.shape_cast %55 : vector<1x4x128xbf16> to vector<4x128xbf16>
    %c0_43 = arith.constant 0 : index
    %c32 = arith.constant 32 : index
    %c0_44 = arith.constant 0 : index
    %57 = vector.load %arg1[%c0_43, %c32, %c0_44] : memref<3x36x128xbf16, #tpu.memory_space<vmem>>, vector<1x4x128xbf16>
    %58 = vector.shape_cast %57 : vector<1x4x128xbf16> to vector<4x128xbf16>
    %59 = arith.maximumf %42, %44 : vector<4x128xbf16>
    %60 = arith.maximumf %46, %48 : vector<4x128xbf16>
    %61 = arith.maximumf %50, %52 : vector<4x128xbf16>
    %62 = arith.maximumf %54, %56 : vector<4x128xbf16>
    %63 = arith.maximumf %59, %60 : vector<4x128xbf16>
    %64 = arith.maximumf %61, %62 : vector<4x128xbf16>
    %65 = arith.maximumf %63, %64 : vector<4x128xbf16>
    %66 = arith.maximumf %65, %58 : vector<4x128xbf16>
    %67 = arith.extf %66 : vector<4x128xbf16> to vector<4x128xf32>
    %68 = vector.extract_strided_slice %67 {offsets = [0, 0], sizes = [4, 20], strides = [1, 1]} : vector<4x128xf32> to vector<4x20xf32>
    %69 = vector.extract_strided_slice %67 {offsets = [0, 4], sizes = [4, 20], strides = [1, 1]} : vector<4x128xf32> to vector<4x20xf32>
    %70 = arith.maximumf %68, %69 : vector<4x20xf32>
    %71 = vector.extract_strided_slice %67 {offsets = [0, 8], sizes = [4, 20], strides = [1, 1]} : vector<4x128xf32> to vector<4x20xf32>
    %72 = arith.maximumf %70, %71 : vector<4x20xf32>
    %73 = vector.extract_strided_slice %67 {offsets = [0, 12], sizes = [4, 20], strides = [1, 1]} : vector<4x128xf32> to vector<4x20xf32>
    %74 = arith.maximumf %72, %73 : vector<4x20xf32>
    %75 = vector.extract_strided_slice %67 {offsets = [0, 16], sizes = [4, 20], strides = [1, 1]} : vector<4x128xf32> to vector<4x20xf32>
    %76 = arith.maximumf %74, %75 : vector<4x20xf32>
    %cst_45 = arith.constant 0.000000e+00 : f32
    %77 = vector.broadcast %cst_45 : f32 to vector<4x20xf32>
    %78 = arith.maximumf %76, %77 : vector<4x20xf32>
    %79 = arith.truncf %78 : vector<4x20xf32> to vector<4x20xbf16>
    %c0_46 = arith.constant 0 : index
    %c0_47 = arith.constant 0 : index
    %c0_48 = arith.constant 0 : index
    %80 = vector.load %arg4[%c0_46, %c0_47, %c0_48] : memref<3x4x128xbf16, #tpu.memory_space<vmem>>, vector<1x4x20xbf16>
    %81 = vector.shape_cast %80 : vector<1x4x20xbf16> to vector<4x20xbf16>
    %82 = vector.shape_cast %79 : vector<4x20xbf16> to vector<1x4x20xbf16>
    tpu.vector_store %arg4[%c0_46, %c0_47, %c0_48], %82 {strides = array<i32>} : memref<3x4x128xbf16, #tpu.memory_space<vmem>>, vector<1x4x20xbf16>,
    %c1_49 = arith.constant 1 : index
    %c0_50 = arith.constant 0 : index
    %c0_51 = arith.constant 0 : index
    %83 = vector.load %arg1[%c1_49, %c0_50, %c0_51] : memref<3x36x128xbf16, #tpu.memory_space<vmem>>, vector<1x36x128xbf16>
    %84 = vector.shape_cast %83 : vector<1x36x128xbf16> to vector<36x128xbf16>
    %c0_52 = arith.constant 0 : index
    %c0_53 = arith.constant 0 : index
    %c0_54 = arith.constant 0 : index
    %85 = vector.load %arg2[%c0_52, %c0_53, %c0_54] : memref<5x4x36xbf16, #tpu.memory_space<vmem>>, vector<1x4x36xbf16>
    %86 = vector.shape_cast %85 : vector<1x4x36xbf16> to vector<4x36xbf16>
    %cst_55 = arith.constant dense<0.000000e+00> : vector<4x128xf32>
    %87 = tpu.matmul %86, %84, %cst_55 {dimension_numbers = #tpu.dot_dimension_numbers<[1], [0], [0], [1], [0, 0, 1, 1], [], []>} : vector<4x36xbf16>, vector<36x128xbf16>, vector<4x128xf32> -> vector<4x128xf32>
    %88 = vector.extract_strided_slice %87 {offsets = [0, 0], sizes = [4, 20], strides = [1, 1]} : vector<4x128xf32> to vector<4x20xf32>
    %c1_56 = arith.constant 1 : index
    %c0_57 = arith.constant 0 : index
    %c0_58 = arith.constant 0 : index
    %89 = vector.load %arg2[%c1_56, %c0_57, %c0_58] : memref<5x4x36xbf16, #tpu.memory_space<vmem>>, vector<1x4x36xbf16>
    %90 = vector.shape_cast %89 : vector<1x4x36xbf16> to vector<4x36xbf16>
    %cst_59 = arith.constant dense<0.000000e+00> : vector<4x128xf32>
    %91 = tpu.matmul %90, %84, %cst_59 {dimension_numbers = #tpu.dot_dimension_numbers<[1], [0], [0], [1], [0, 0, 1, 1], [], []>} : vector<4x36xbf16>, vector<36x128xbf16>, vector<4x128xf32> -> vector<4x128xf32>
    %92 = vector.extract_strided_slice %91 {offsets = [0, 4], sizes = [4, 20], strides = [1, 1]} : vector<4x128xf32> to vector<4x20xf32>
    %93 = arith.addf %88, %92 : vector<4x20xf32>
    %c2_60 = arith.constant 2 : index
    %c0_61 = arith.constant 0 : index
    %c0_62 = arith.constant 0 : index
    %94 = vector.load %arg2[%c2_60, %c0_61, %c0_62] : memref<5x4x36xbf16, #tpu.memory_space<vmem>>, vector<1x4x36xbf16>
    %95 = vector.shape_cast %94 : vector<1x4x36xbf16> to vector<4x36xbf16>
    %cst_63 = arith.constant dense<0.000000e+00> : vector<4x128xf32>
    %96 = tpu.matmul %95, %84, %cst_63 {dimension_numbers = #tpu.dot_dimension_numbers<[1], [0], [0], [1], [0, 0, 1, 1], [], []>} : vector<4x36xbf16>, vector<36x128xbf16>, vector<4x128xf32> -> vector<4x128xf32>
    %97 = vector.extract_strided_slice %96 {offsets = [0, 8], sizes = [4, 20], strides = [1, 1]} : vector<4x128xf32> to vector<4x20xf32>
    %98 = arith.addf %93, %97 : vector<4x20xf32>
    %c3_64 = arith.constant 3 : index
    %c0_65 = arith.constant 0 : index
    %c0_66 = arith.constant 0 : index
    %99 = vector.load %arg2[%c3_64, %c0_65, %c0_66] : memref<5x4x36xbf16, #tpu.memory_space<vmem>>, vector<1x4x36xbf16>
    %100 = vector.shape_cast %99 : vector<1x4x36xbf16> to vector<4x36xbf16>
    %cst_67 = arith.constant dense<0.000000e+00> : vector<4x128xf32>
    %101 = tpu.matmul %100, %84, %cst_67 {dimension_numbers = #tpu.dot_dimension_numbers<[1], [0], [0], [1], [0, 0, 1, 1], [], []>} : vector<4x36xbf16>, vector<36x128xbf16>, vector<4x128xf32> -> vector<4x128xf32>
    %102 = vector.extract_strided_slice %101 {offsets = [0, 12], sizes = [4, 20], strides = [1, 1]} : vector<4x128xf32> to vector<4x20xf32>
    %103 = arith.addf %98, %102 : vector<4x20xf32>
    %c4_68 = arith.constant 4 : index
    %c0_69 = arith.constant 0 : index
    %c0_70 = arith.constant 0 : index
    %104 = vector.load %arg2[%c4_68, %c0_69, %c0_70] : memref<5x4x36xbf16, #tpu.memory_space<vmem>>, vector<1x4x36xbf16>
    %105 = vector.shape_cast %104 : vector<1x4x36xbf16> to vector<4x36xbf16>
    %cst_71 = arith.constant dense<0.000000e+00> : vector<4x128xf32>
    %106 = tpu.matmul %105, %84, %cst_71 {dimension_numbers = #tpu.dot_dimension_numbers<[1], [0], [0], [1], [0, 0, 1, 1], [], []>} : vector<4x36xbf16>, vector<36x128xbf16>, vector<4x128xf32> -> vector<4x128xf32>
    %107 = vector.extract_strided_slice %106 {offsets = [0, 16], sizes = [4, 20], strides = [1, 1]} : vector<4x128xf32> to vector<4x20xf32>
    %108 = arith.addf %103, %107 : vector<4x20xf32>
    %cst_72 = arith.constant 0.000000e+00 : f32
    %109 = vector.broadcast %cst_72 : f32 to vector<4x20xf32>
    %110 = arith.maximumf %108, %109 : vector<4x20xf32>
    %111 = arith.truncf %110 : vector<4x20xf32> to vector<4x20xbf16>
    %c1_73 = arith.constant 1 : index
    %c0_74 = arith.constant 0 : index
    %c0_75 = arith.constant 0 : index
    %112 = vector.load %arg3[%c1_73, %c0_74, %c0_75] : memref<3x4x128xbf16, #tpu.memory_space<vmem>>, vector<1x4x20xbf16>
    %113 = vector.shape_cast %112 : vector<1x4x20xbf16> to vector<4x20xbf16>
    %114 = vector.shape_cast %111 : vector<4x20xbf16> to vector<1x4x20xbf16>
    tpu.vector_store %arg3[%c1_73, %c0_74, %c0_75], %114 {strides = array<i32>} : memref<3x4x128xbf16, #tpu.memory_space<vmem>>, vector<1x4x20xbf16>,
    %cst_76 = arith.constant dense<0.000000e+00> : vector<4xf32>
    %115 = vector.multi_reduction <add>, %110, %cst_76 [1] : vector<4x20xf32> to vector<4xf32>
    %116 = vector.shape_cast %115 : vector<4xf32> to vector<4x1xf32>
    %117 = arith.addf %36, %116 : vector<4x1xf32>
    %118 = arith.mulf %110, %110 : vector<4x20xf32>
    %cst_77 = arith.constant dense<0.000000e+00> : vector<4xf32>
    %119 = vector.multi_reduction <add>, %118, %cst_77 [1] : vector<4x20xf32> to vector<4xf32>
    %120 = vector.shape_cast %119 : vector<4xf32> to vector<4x1xf32>
    %121 = arith.addf %40, %120 : vector<4x1xf32>
    %c1_78 = arith.constant 1 : index
    %c0_79 = arith.constant 0 : index
    %c0_80 = arith.constant 0 : index
    %122 = vector.load %arg1[%c1_78, %c0_79, %c0_80] : memref<3x36x128xbf16, #tpu.memory_space<vmem>>, vector<1x4x128xbf16>
    %123 = vector.shape_cast %122 : vector<1x4x128xbf16> to vector<4x128xbf16>
    %c1_81 = arith.constant 1 : index
    %c4_82 = arith.constant 4 : index
    %c0_83 = arith.constant 0 : index
    %124 = vector.load %arg1[%c1_81, %c4_82, %c0_83] : memref<3x36x128xbf16, #tpu.memory_space<vmem>>, vector<1x4x128xbf16>
    %125 = vector.shape_cast %124 : vector<1x4x128xbf16> to vector<4x128xbf16>
    %c1_84 = arith.constant 1 : index
    %c8_85 = arith.constant 8 : index
    %c0_86 = arith.constant 0 : index
    %126 = vector.load %arg1[%c1_84, %c8_85, %c0_86] : memref<3x36x128xbf16, #tpu.memory_space<vmem>>, vector<1x4x128xbf16>
    %127 = vector.shape_cast %126 : vector<1x4x128xbf16> to vector<4x128xbf16>
    %c1_87 = arith.constant 1 : index
    %c12_88 = arith.constant 12 : index
    %c0_89 = arith.constant 0 : index
    %128 = vector.load %arg1[%c1_87, %c12_88, %c0_89] : memref<3x36x128xbf16, #tpu.memory_space<vmem>>, vector<1x4x128xbf16>
    %129 = vector.shape_cast %128 : vector<1x4x128xbf16> to vector<4x128xbf16>
    %c1_90 = arith.constant 1 : index
    %c16_91 = arith.constant 16 : index
    %c0_92 = arith.constant 0 : index
    %130 = vector.load %arg1[%c1_90, %c16_91, %c0_92] : memref<3x36x128xbf16, #tpu.memory_space<vmem>>, vector<1x4x128xbf16>
    %131 = vector.shape_cast %130 : vector<1x4x128xbf16> to vector<4x128xbf16>
    %c1_93 = arith.constant 1 : index
    %c20_94 = arith.constant 20 : index
    %c0_95 = arith.constant 0 : index
    %132 = vector.load %arg1[%c1_93, %c20_94, %c0_95] : memref<3x36x128xbf16, #tpu.memory_space<vmem>>, vector<1x4x128xbf16>
    %133 = vector.shape_cast %132 : vector<1x4x128xbf16> to vector<4x128xbf16>
    %c1_96 = arith.constant 1 : index
    %c24_97 = arith.constant 24 : index
    %c0_98 = arith.constant 0 : index
    %134 = vector.load %arg1[%c1_96, %c24_97, %c0_98] : memref<3x36x128xbf16, #tpu.memory_space<vmem>>, vector<1x4x128xbf16>
    %135 = vector.shape_cast %134 : vector<1x4x128xbf16> to vector<4x128xbf16>
    %c1_99 = arith.constant 1 : index
    %c28_100 = arith.constant 28 : index
    %c0_101 = arith.constant 0 : index
    %136 = vector.load %arg1[%c1_99, %c28_100, %c0_101] : memref<3x36x128xbf16, #tpu.memory_space<vmem>>, vector<1x4x128xbf16>
    %137 = vector.shape_cast %136 : vector<1x4x128xbf16> to vector<4x128xbf16>
    %c1_102 = arith.constant 1 : index
    %c32_103 = arith.constant 32 : index
    %c0_104 = arith.constant 0 : index
    %138 = vector.load %arg1[%c1_102, %c32_103, %c0_104] : memref<3x36x128xbf16, #tpu.memory_space<vmem>>, vector<1x4x128xbf16>
    %139 = vector.shape_cast %138 : vector<1x4x128xbf16> to vector<4x128xbf16>
    %140 = arith.maximumf %123, %125 : vector<4x128xbf16>
    %141 = arith.maximumf %127, %129 : vector<4x128xbf16>
    %142 = arith.maximumf %131, %133 : vector<4x128xbf16>
    %143 = arith.maximumf %135, %137 : vector<4x128xbf16>
    %144 = arith.maximumf %140, %141 : vector<4x128xbf16>
    %145 = arith.maximumf %142, %143 : vector<4x128xbf16>
    %146 = arith.maximumf %144, %145 : vector<4x128xbf16>
    %147 = arith.maximumf %146, %139 : vector<4x128xbf16>
    %148 = arith.extf %147 : vector<4x128xbf16> to vector<4x128xf32>
    %149 = vector.extract_strided_slice %148 {offsets = [0, 0], sizes = [4, 20], strides = [1, 1]} : vector<4x128xf32> to vector<4x20xf32>
    %150 = vector.extract_strided_slice %148 {offsets = [0, 4], sizes = [4, 20], strides = [1, 1]} : vector<4x128xf32> to vector<4x20xf32>
    %151 = arith.maximumf %149, %150 : vector<4x20xf32>
    %152 = vector.extract_strided_slice %148 {offsets = [0, 8], sizes = [4, 20], strides = [1, 1]} : vector<4x128xf32> to vector<4x20xf32>
    %153 = arith.maximumf %151, %152 : vector<4x20xf32>
    %154 = vector.extract_strided_slice %148 {offsets = [0, 12], sizes = [4, 20], strides = [1, 1]} : vector<4x128xf32> to vector<4x20xf32>
    %155 = arith.maximumf %153, %154 : vector<4x20xf32>
    %156 = vector.extract_strided_slice %148 {offsets = [0, 16], sizes = [4, 20], strides = [1, 1]} : vector<4x128xf32> to vector<4x20xf32>
    %157 = arith.maximumf %155, %156 : vector<4x20xf32>
    %cst_105 = arith.constant 0.000000e+00 : f32
    %158 = vector.broadcast %cst_105 : f32 to vector<4x20xf32>
    %159 = arith.maximumf %157, %158 : vector<4x20xf32>
    %160 = arith.truncf %159 : vector<4x20xf32> to vector<4x20xbf16>
    %c1_106 = arith.constant 1 : index
    %c0_107 = arith.constant 0 : index
    %c0_108 = arith.constant 0 : index
    %161 = vector.load %arg4[%c1_106, %c0_107, %c0_108] : memref<3x4x128xbf16, #tpu.memory_space<vmem>>, vector<1x4x20xbf16>
    %162 = vector.shape_cast %161 : vector<1x4x20xbf16> to vector<4x20xbf16>
    %163 = vector.shape_cast %160 : vector<4x20xbf16> to vector<1x4x20xbf16>
    tpu.vector_store %arg4[%c1_106, %c0_107, %c0_108], %163 {strides = array<i32>} : memref<3x4x128xbf16, #tpu.memory_space<vmem>>, vector<1x4x20xbf16>,
    %c2_109 = arith.constant 2 : index
    %c0_110 = arith.constant 0 : index
    %c0_111 = arith.constant 0 : index
    %164 = vector.load %arg1[%c2_109, %c0_110, %c0_111] : memref<3x36x128xbf16, #tpu.memory_space<vmem>>, vector<1x36x128xbf16>
    %165 = vector.shape_cast %164 : vector<1x36x128xbf16> to vector<36x128xbf16>
    %c0_112 = arith.constant 0 : index
    %c0_113 = arith.constant 0 : index
    %c0_114 = arith.constant 0 : index
    %166 = vector.load %arg2[%c0_112, %c0_113, %c0_114] : memref<5x4x36xbf16, #tpu.memory_space<vmem>>, vector<1x4x36xbf16>
    %167 = vector.shape_cast %166 : vector<1x4x36xbf16> to vector<4x36xbf16>
    %cst_115 = arith.constant dense<0.000000e+00> : vector<4x128xf32>
    %168 = tpu.matmul %167, %165, %cst_115 {dimension_numbers = #tpu.dot_dimension_numbers<[1], [0], [0], [1], [0, 0, 1, 1], [], []>} : vector<4x36xbf16>, vector<36x128xbf16>, vector<4x128xf32> -> vector<4x128xf32>
    %169 = vector.extract_strided_slice %168 {offsets = [0, 0], sizes = [4, 20], strides = [1, 1]} : vector<4x128xf32> to vector<4x20xf32>
    %c1_116 = arith.constant 1 : index
    %c0_117 = arith.constant 0 : index
    %c0_118 = arith.constant 0 : index
    %170 = vector.load %arg2[%c1_116, %c0_117, %c0_118] : memref<5x4x36xbf16, #tpu.memory_space<vmem>>, vector<1x4x36xbf16>
    %171 = vector.shape_cast %170 : vector<1x4x36xbf16> to vector<4x36xbf16>
    %cst_119 = arith.constant dense<0.000000e+00> : vector<4x128xf32>
    %172 = tpu.matmul %171, %165, %cst_119 {dimension_numbers = #tpu.dot_dimension_numbers<[1], [0], [0], [1], [0, 0, 1, 1], [], []>} : vector<4x36xbf16>, vector<36x128xbf16>, vector<4x128xf32> -> vector<4x128xf32>
    %173 = vector.extract_strided_slice %172 {offsets = [0, 4], sizes = [4, 20], strides = [1, 1]} : vector<4x128xf32> to vector<4x20xf32>
    %174 = arith.addf %169, %173 : vector<4x20xf32>
    %c2_120 = arith.constant 2 : index
    %c0_121 = arith.constant 0 : index
    %c0_122 = arith.constant 0 : index
    %175 = vector.load %arg2[%c2_120, %c0_121, %c0_122] : memref<5x4x36xbf16, #tpu.memory_space<vmem>>, vector<1x4x36xbf16>
    %176 = vector.shape_cast %175 : vector<1x4x36xbf16> to vector<4x36xbf16>
    %cst_123 = arith.constant dense<0.000000e+00> : vector<4x128xf32>
    %177 = tpu.matmul %176, %165, %cst_123 {dimension_numbers = #tpu.dot_dimension_numbers<[1], [0], [0], [1], [0, 0, 1, 1], [], []>} : vector<4x36xbf16>, vector<36x128xbf16>, vector<4x128xf32> -> vector<4x128xf32>
    %178 = vector.extract_strided_slice %177 {offsets = [0, 8], sizes = [4, 20], strides = [1, 1]} : vector<4x128xf32> to vector<4x20xf32>
    %179 = arith.addf %174, %178 : vector<4x20xf32>
    %c3_124 = arith.constant 3 : index
    %c0_125 = arith.constant 0 : index
    %c0_126 = arith.constant 0 : index
    %180 = vector.load %arg2[%c3_124, %c0_125, %c0_126] : memref<5x4x36xbf16, #tpu.memory_space<vmem>>, vector<1x4x36xbf16>
    %181 = vector.shape_cast %180 : vector<1x4x36xbf16> to vector<4x36xbf16>
    %cst_127 = arith.constant dense<0.000000e+00> : vector<4x128xf32>
    %182 = tpu.matmul %181, %165, %cst_127 {dimension_numbers = #tpu.dot_dimension_numbers<[1], [0], [0], [1], [0, 0, 1, 1], [], []>} : vector<4x36xbf16>, vector<36x128xbf16>, vector<4x128xf32> -> vector<4x128xf32>
    %183 = vector.extract_strided_slice %182 {offsets = [0, 12], sizes = [4, 20], strides = [1, 1]} : vector<4x128xf32> to vector<4x20xf32>
    %184 = arith.addf %179, %183 : vector<4x20xf32>
    %c4_128 = arith.constant 4 : index
    %c0_129 = arith.constant 0 : index
    %c0_130 = arith.constant 0 : index
    %185 = vector.load %arg2[%c4_128, %c0_129, %c0_130] : memref<5x4x36xbf16, #tpu.memory_space<vmem>>, vector<1x4x36xbf16>
    %186 = vector.shape_cast %185 : vector<1x4x36xbf16> to vector<4x36xbf16>
    %cst_131 = arith.constant dense<0.000000e+00> : vector<4x128xf32>
    %187 = tpu.matmul %186, %165, %cst_131 {dimension_numbers = #tpu.dot_dimension_numbers<[1], [0], [0], [1], [0, 0, 1, 1], [], []>} : vector<4x36xbf16>, vector<36x128xbf16>, vector<4x128xf32> -> vector<4x128xf32>
    %188 = vector.extract_strided_slice %187 {offsets = [0, 16], sizes = [4, 20], strides = [1, 1]} : vector<4x128xf32> to vector<4x20xf32>
    %189 = arith.addf %184, %188 : vector<4x20xf32>
    %cst_132 = arith.constant 0.000000e+00 : f32
    %190 = vector.broadcast %cst_132 : f32 to vector<4x20xf32>
    %191 = arith.maximumf %189, %190 : vector<4x20xf32>
    %192 = arith.truncf %191 : vector<4x20xf32> to vector<4x20xbf16>
    %c2_133 = arith.constant 2 : index
    %c0_134 = arith.constant 0 : index
    %c0_135 = arith.constant 0 : index
    %193 = vector.load %arg3[%c2_133, %c0_134, %c0_135] : memref<3x4x128xbf16, #tpu.memory_space<vmem>>, vector<1x4x20xbf16>
    %194 = vector.shape_cast %193 : vector<1x4x20xbf16> to vector<4x20xbf16>
    %195 = vector.shape_cast %192 : vector<4x20xbf16> to vector<1x4x20xbf16>
    tpu.vector_store %arg3[%c2_133, %c0_134, %c0_135], %195 {strides = array<i32>} : memref<3x4x128xbf16, #tpu.memory_space<vmem>>, vector<1x4x20xbf16>,
    %cst_136 = arith.constant dense<0.000000e+00> : vector<4xf32>
    %196 = vector.multi_reduction <add>, %191, %cst_136 [1] : vector<4x20xf32> to vector<4xf32>
    %197 = vector.shape_cast %196 : vector<4xf32> to vector<4x1xf32>
    %198 = arith.addf %117, %197 : vector<4x1xf32>
    %199 = arith.mulf %191, %191 : vector<4x20xf32>
    %cst_137 = arith.constant dense<0.000000e+00> : vector<4xf32>
    %200 = vector.multi_reduction <add>, %199, %cst_137 [1] : vector<4x20xf32> to vector<4xf32>
    %201 = vector.shape_cast %200 : vector<4xf32> to vector<4x1xf32>
    %202 = arith.addf %121, %201 : vector<4x1xf32>
    %c2_138 = arith.constant 2 : index
    %c0_139 = arith.constant 0 : index
    %c0_140 = arith.constant 0 : index
    %203 = vector.load %arg1[%c2_138, %c0_139, %c0_140] : memref<3x36x128xbf16, #tpu.memory_space<vmem>>, vector<1x4x128xbf16>
    %204 = vector.shape_cast %203 : vector<1x4x128xbf16> to vector<4x128xbf16>
    %c2_141 = arith.constant 2 : index
    %c4_142 = arith.constant 4 : index
    %c0_143 = arith.constant 0 : index
    %205 = vector.load %arg1[%c2_141, %c4_142, %c0_143] : memref<3x36x128xbf16, #tpu.memory_space<vmem>>, vector<1x4x128xbf16>
    %206 = vector.shape_cast %205 : vector<1x4x128xbf16> to vector<4x128xbf16>
    %c2_144 = arith.constant 2 : index
    %c8_145 = arith.constant 8 : index
    %c0_146 = arith.constant 0 : index
    %207 = vector.load %arg1[%c2_144, %c8_145, %c0_146] : memref<3x36x128xbf16, #tpu.memory_space<vmem>>, vector<1x4x128xbf16>
    %208 = vector.shape_cast %207 : vector<1x4x128xbf16> to vector<4x128xbf16>
    %c2_147 = arith.constant 2 : index
    %c12_148 = arith.constant 12 : index
    %c0_149 = arith.constant 0 : index
    %209 = vector.load %arg1[%c2_147, %c12_148, %c0_149] : memref<3x36x128xbf16, #tpu.memory_space<vmem>>, vector<1x4x128xbf16>
    %210 = vector.shape_cast %209 : vector<1x4x128xbf16> to vector<4x128xbf16>
    %c2_150 = arith.constant 2 : index
    %c16_151 = arith.constant 16 : index
    %c0_152 = arith.constant 0 : index
    %211 = vector.load %arg1[%c2_150, %c16_151, %c0_152] : memref<3x36x128xbf16, #tpu.memory_space<vmem>>, vector<1x4x128xbf16>
    %212 = vector.shape_cast %211 : vector<1x4x128xbf16> to vector<4x128xbf16>
    %c2_153 = arith.constant 2 : index
    %c20_154 = arith.constant 20 : index
    %c0_155 = arith.constant 0 : index
    %213 = vector.load %arg1[%c2_153, %c20_154, %c0_155] : memref<3x36x128xbf16, #tpu.memory_space<vmem>>, vector<1x4x128xbf16>
    %214 = vector.shape_cast %213 : vector<1x4x128xbf16> to vector<4x128xbf16>
    %c2_156 = arith.constant 2 : index
    %c24_157 = arith.constant 24 : index
    %c0_158 = arith.constant 0 : index
    %215 = vector.load %arg1[%c2_156, %c24_157, %c0_158] : memref<3x36x128xbf16, #tpu.memory_space<vmem>>, vector<1x4x128xbf16>
    %216 = vector.shape_cast %215 : vector<1x4x128xbf16> to vector<4x128xbf16>
    %c2_159 = arith.constant 2 : index
    %c28_160 = arith.constant 28 : index
    %c0_161 = arith.constant 0 : index
    %217 = vector.load %arg1[%c2_159, %c28_160, %c0_161] : memref<3x36x128xbf16, #tpu.memory_space<vmem>>, vector<1x4x128xbf16>
    %218 = vector.shape_cast %217 : vector<1x4x128xbf16> to vector<4x128xbf16>
    %c2_162 = arith.constant 2 : index
    %c32_163 = arith.constant 32 : index
    %c0_164 = arith.constant 0 : index
    %219 = vector.load %arg1[%c2_162, %c32_163, %c0_164] : memref<3x36x128xbf16, #tpu.memory_space<vmem>>, vector<1x4x128xbf16>
    %220 = vector.shape_cast %219 : vector<1x4x128xbf16> to vector<4x128xbf16>
    %221 = arith.maximumf %204, %206 : vector<4x128xbf16>
    %222 = arith.maximumf %208, %210 : vector<4x128xbf16>
    %223 = arith.maximumf %212, %214 : vector<4x128xbf16>
    %224 = arith.maximumf %216, %218 : vector<4x128xbf16>
    %225 = arith.maximumf %221, %222 : vector<4x128xbf16>
    %226 = arith.maximumf %223, %224 : vector<4x128xbf16>
    %227 = arith.maximumf %225, %226 : vector<4x128xbf16>
    %228 = arith.maximumf %227, %220 : vector<4x128xbf16>
    %229 = arith.extf %228 : vector<4x128xbf16> to vector<4x128xf32>
    %230 = vector.extract_strided_slice %229 {offsets = [0, 0], sizes = [4, 20], strides = [1, 1]} : vector<4x128xf32> to vector<4x20xf32>
    %231 = vector.extract_strided_slice %229 {offsets = [0, 4], sizes = [4, 20], strides = [1, 1]} : vector<4x128xf32> to vector<4x20xf32>
    %232 = arith.maximumf %230, %231 : vector<4x20xf32>
    %233 = vector.extract_strided_slice %229 {offsets = [0, 8], sizes = [4, 20], strides = [1, 1]} : vector<4x128xf32> to vector<4x20xf32>
    %234 = arith.maximumf %232, %233 : vector<4x20xf32>
    %235 = vector.extract_strided_slice %229 {offsets = [0, 12], sizes = [4, 20], strides = [1, 1]} : vector<4x128xf32> to vector<4x20xf32>
    %236 = arith.maximumf %234, %235 : vector<4x20xf32>
    %237 = vector.extract_strided_slice %229 {offsets = [0, 16], sizes = [4, 20], strides = [1, 1]} : vector<4x128xf32> to vector<4x20xf32>
    %238 = arith.maximumf %236, %237 : vector<4x20xf32>
    %cst_165 = arith.constant 0.000000e+00 : f32
    %239 = vector.broadcast %cst_165 : f32 to vector<4x20xf32>
    %240 = arith.maximumf %238, %239 : vector<4x20xf32>
    %241 = arith.truncf %240 : vector<4x20xf32> to vector<4x20xbf16>
    %c2_166 = arith.constant 2 : index
    %c0_167 = arith.constant 0 : index
    %c0_168 = arith.constant 0 : index
    %242 = vector.load %arg4[%c2_166, %c0_167, %c0_168] : memref<3x4x128xbf16, #tpu.memory_space<vmem>>, vector<1x4x20xbf16>
    %243 = vector.shape_cast %242 : vector<1x4x20xbf16> to vector<4x20xbf16>
    %244 = vector.shape_cast %241 : vector<4x20xbf16> to vector<1x4x20xbf16>
    tpu.vector_store %arg4[%c2_166, %c0_167, %c0_168], %244 {strides = array<i32>} : memref<3x4x128xbf16, #tpu.memory_space<vmem>>, vector<1x4x20xbf16>,
    %245 = tpu.concatenate %198, %202 in 1 : vector<4x1xf32>, vector<4x1xf32> -> vector<4x2xf32>
    %c0_169 = arith.constant 0 : index
    %c0_170 = arith.constant 0 : index
    %c0_171 = arith.constant 0 : index
    %246 = vector.load %arg5[%c0_169, %c0_170, %c0_171] : memref<1x4x2xf32, #tpu.memory_space<vmem>>, vector<1x4x2xf32>
    %247 = vector.shape_cast %246 : vector<1x4x2xf32> to vector<4x2xf32>
    %248 = vector.shape_cast %245 : vector<4x2xf32> to vector<1x4x2xf32>
    tpu.vector_store %arg5[%c0_169, %c0_170, %c0_171], %248 {strides = array<i32>} : memref<1x4x2xf32, #tpu.memory_space<vmem>>, vector<1x4x2xf32>,
    return
  }
  func.func @transform_0(%arg0: i32) -> (i32, i32, i32) {
    %c0_i32 = arith.constant 0 : i32
    %c0_i32_0 = arith.constant 0 : i32
    %c0_i32_1 = arith.constant 0 : i32
    return %arg0, %c0_i32, %c0_i32_0 : i32, i32, i32
  }
  func.func @transform_1(%arg0: i32) -> (i32, i32, i32) {
    %c0_i32 = arith.constant 0 : i32
    %c0_i32_0 = arith.constant 0 : i32
    %c0_i32_1 = arith.constant 0 : i32
    %c0_i32_2 = arith.constant 0 : i32
    return %c0_i32, %c0_i32_0, %c0_i32_1 : i32, i32, i32
  }
  func.func @transform_2(%arg0: i32) -> (i32, i32, i32) {
    %c0_i32 = arith.constant 0 : i32
    %c0_i32_0 = arith.constant 0 : i32
    %c0_i32_1 = arith.constant 0 : i32
    return %arg0, %c0_i32, %c0_i32_0 : i32, i32, i32
  }
  func.func @transform_3(%arg0: i32) -> (i32, i32, i32) {
    %c0_i32 = arith.constant 0 : i32
    %c0_i32_0 = arith.constant 0 : i32
    %c0_i32_1 = arith.constant 0 : i32
    return %arg0, %c0_i32, %c0_i32_0 : i32, i32, i32
  }
  func.func @transform_4(%arg0: i32) -> (i32, i32, i32) {
    %c0_i32 = arith.constant 0 : i32
    %c0_i32_0 = arith.constant 0 : i32
    %c0_i32_1 = arith.constant 0 : i32
    return %arg0, %c0_i32, %c0_i32_0 : i32, i32, i32
  }
}

module attributes {stable_mosaic.version = 11 : i64} {
  func.func @_s4_stage2_kernel(%arg0: i32, %arg1: memref<3x4x128xbf16, #tpu.memory_space<vmem>>, %arg2: memref<4x1xf32, #tpu.memory_space<vmem>>, %arg3: memref<4x1xf32, #tpu.memory_space<vmem>>, %arg4: memref<3x4x128xf32, #tpu.memory_space<vmem>>) attributes {dimension_semantics = [#tpu.dimension_semantics<parallel>], iteration_bounds = array<i64: 3>, scalar_prefetch = 0 : i64, scratch_operands = 0 : i64, tpu.core_type = #tpu.core_type<tc>, window_params = [{transform_indices = @transform_0, window_bounds = array<i64: 3, 4, 128>}, {pipeline_mode = #tpu.pipeline_mode<synchronous>, transform_indices = @transform_1, window_bounds = array<i64: 4, 1>}, {pipeline_mode = #tpu.pipeline_mode<synchronous>, transform_indices = @transform_2, window_bounds = array<i64: 4, 1>}, {transform_indices = @transform_3, window_bounds = array<i64: 3, 4, 128>}]} {
    %c0 = arith.constant 0 : index
    %c0_0 = arith.constant 0 : index
    %c0_1 = arith.constant 0 : index
    %0 = vector.load %arg1[%c0, %c0_0, %c0_1] : memref<3x4x128xbf16, #tpu.memory_space<vmem>>, vector<3x4x128xbf16>
    %1 = arith.extf %0 : vector<3x4x128xbf16> to vector<3x4x128xf32>
    %c0_2 = arith.constant 0 : index
    %c0_3 = arith.constant 0 : index
    %2 = vector.load %arg2[%c0_2, %c0_3] : memref<4x1xf32, #tpu.memory_space<vmem>>, vector<4x1xf32>
    %3 = vector.shape_cast %2 : vector<4x1xf32> to vector<1x4x1xf32>
    %4 = vector.broadcast %3 : vector<1x4x1xf32> to vector<3x4x128xf32>
    %5 = arith.mulf %1, %4 : vector<3x4x128xf32>
    %c0_4 = arith.constant 0 : index
    %c0_5 = arith.constant 0 : index
    %6 = vector.load %arg3[%c0_4, %c0_5] : memref<4x1xf32, #tpu.memory_space<vmem>>, vector<4x1xf32>
    %7 = vector.shape_cast %6 : vector<4x1xf32> to vector<1x4x1xf32>
    %8 = vector.broadcast %7 : vector<1x4x1xf32> to vector<3x4x128xf32>
    %9 = arith.addf %5, %8 : vector<3x4x128xf32>
    %cst = arith.constant 0.000000e+00 : f32
    %10 = vector.broadcast %cst : f32 to vector<3x4x128xf32>
    %11 = arith.maximumf %9, %10 : vector<3x4x128xf32>
    %c0_6 = arith.constant 0 : index
    %c0_7 = arith.constant 0 : index
    %c0_8 = arith.constant 0 : index
    %12 = vector.load %arg4[%c0_6, %c0_7, %c0_8] : memref<3x4x128xf32, #tpu.memory_space<vmem>>, vector<3x4x128xf32>
    tpu.vector_store %arg4[%c0_6, %c0_7, %c0_8], %11 {strides = array<i32>} : memref<3x4x128xf32, #tpu.memory_space<vmem>>, vector<3x4x128xf32>,
    return
  }
  func.func @transform_0(%arg0: i32) -> (i32, i32, i32) {
    %c0_i32 = arith.constant 0 : i32
    %c0_i32_0 = arith.constant 0 : i32
    %c0_i32_1 = arith.constant 0 : i32
    return %arg0, %c0_i32, %c0_i32_0 : i32, i32, i32
  }
  func.func @transform_1(%arg0: i32) -> (i32, i32) {
    %c0_i32 = arith.constant 0 : i32
    %c0_i32_0 = arith.constant 0 : i32
    %c0_i32_1 = arith.constant 0 : i32
    return %c0_i32, %c0_i32_0 : i32, i32
  }
  func.func @transform_2(%arg0: i32) -> (i32, i32) {
    %c0_i32 = arith.constant 0 : i32
    %c0_i32_0 = arith.constant 0 : i32
    %c0_i32_1 = arith.constant 0 : i32
    return %c0_i32, %c0_i32_0 : i32, i32
  }
  func.func @transform_3(%arg0: i32) -> (i32, i32, i32) {
    %c0_i32 = arith.constant 0 : i32
    %c0_i32_0 = arith.constant 0 : i32
    %c0_i32_1 = arith.constant 0 : i32
    return %arg0, %c0_i32, %c0_i32_0 : i32, i32, i32
  }
}

</mosaic_0001>

<bundles_post_ra>
// kernel: s4_forward.3
= control target key start
LH: loop header
LB: loop body
LE: loop exit
PB: predicated region body
PF: predicated region fallthrough
CT: control target
= control target key end

     0   :  { %s308_s12 = smov 0   ;;  %s331_s0 = inlined_call_operand.vmem [shape: bf16[9,4,128], index: 0, kind: input, shape index: {}]   ;;  %s332_s1 = inlined_call_operand.vmem [shape: f32[4,1], index: 1, kind: input, shape index: {}]   ;;  %s333_s2 = inlined_call_operand.vmem [shape: f32[4,1], index: 2, kind: input, shape index: {}]   ;;  %s334_s3 = inlined_call_operand.vmem [shape: f32[9,4,128], index: 3, kind: output, shape index: {}]  }
   0x1 LB: > { %s260_s13 = sadd.s32 4294967295, %s285_s12   ;;  %p264_p0 = scmp.ge.s32.totalorder %s285_s12, 1  ;;  %s285_s12 = sphi %s308_s12, %s13_s12  }
   0x2   : > { %p138_p1 = scmp.lt.s32.totalorder %s285_s12, 4 }
   0x4   : > { %p139_p2 = pnand %p264_p0, %p138_p1 }
   0x5   : > { %v180_v0 = vld [vmem:[%s332_s1] sm:$0xf] (!%p139_p2)  ;;  %v287_v1 = vmov (!%p139_p2), 0   ;;  %s162_s18 = smul.u32 (!%p139_p2), 3, %s260_s13 }
   0x6   : > { %142 = sbr.rel (%p139_p2) target bundleno = 145 (0x91), region = 32  ;;  %278 = vset.pattern.permute.xlu0 (!%p139_p2), %v287_v1  ;;  %v189_v2 = vld [vmem:[%s333_s2] sm:$0xf] (!%p139_p2) }
   0x7   : > { %183 = vperm.xlu0 (!%p139_p2), %278, %v180_v0   ;;  %p163_p3 = scmp.lt.s32.totalorder (!%p139_p2), %s162_s18, 8 }
   0xb   : > { %192 = vperm.xlu0 (!%p139_p2), %278, %v189_v2  }
   0xd   : > { %s336_s18 = smov (!%p163_p3, %s162_s18), 8 }
   0xe   : > { %s265_s19 = sshll.u32 %s336_s18, 1  ;;  %s266_s23 = sshll.u32 %s336_s18, 2 }
   0xf   : > { %s166_s22 = scalar_lea.vmem %s331_s0, %s265_s19  ;;  %s172_s26 = scalar_lea.vmem %s334_s3, %s266_s23 }
  0x10   : > { %v174_v3 = vld [vmem:[%s166_s22] sm:$0x3]  ;;  %v175_v4 = vld [vmem:[%s166_s22 + $0x2] sm:$0x3]  ;;  %v176_v5 = vld [vmem:[%s166_s22 + $0x4] sm:$0x3] }
  0x11   : > { %v177_v6 = vunpack.c.l.bf16 %v174_v3  ;;  %v178_v7 = vunpack.c.l.bf16 %v175_v4  ;;  %v179_v8 = vunpack.c.l.bf16 %v176_v5 }
  0x86   : > { %v184_v9 = vpop.permute.xlu0 %183 }
  0x87   : > { %v186_v10 = vmul.f32 %v184_v9, %v177_v6  ;;  %v187_v11 = vmul.f32 %v184_v9, %v178_v7  ;;  %v188_v12 = vmul.f32 %v184_v9, %v179_v8 }
  0x8a   : > { %v193_v13 = vpop.permute.xlu0 %192 }
  0x8b   : > { %v195_v14 = vadd.f32 %v193_v13, %v186_v10  ;;  %v196_v15 = vadd.f32 %v193_v13, %v187_v11  ;;  %v197_v16 = vadd.f32 %v193_v13, %v188_v12 }
  0x8d   : > { %v198_v17 = vmax.f32 %v195_v14, 0.0  ;;  %v199_v18 = vmax.f32 %v196_v15, 0.0  ;;  %v200_v19 = vmax.f32 %v197_v16, 0.0 }
  0x8f   : > { %201 = vst [vmem:[%s172_s26] sm:$0xf] %v198_v17  ;;  %202 = vst [vmem:[%s172_s26 + $0x4] sm:$0xf] %v199_v18 }
  0x90   : > { %203 = vst [vmem:[%s172_s26 + $0x8] sm:$0xf] %v200_v19 }
  0x91 PF: > { %s13_s12 = sadd.s32 1, %s285_s12  }
  0x92   : > { %p10_p4 = scmp.ge.s32.totalorder %s13_s12, 5  }
  0x94   :  { %12 = sbr.rel (!%p10_p4) target bundleno = 1 (0x1), region = 62 }

// kernel: s4_forward.2
= control target key start
LH: loop header
LB: loop body
LE: loop exit
PB: predicated region body
PF: predicated region fallthrough
CT: control target
= control target key end

     0   :  { %s1739_s15 = smov 0   ;;  %s2012_s0 = inlined_call_operand.vmem [shape: bf16[9,36,128], index: 0, kind: input, shape index: {}]   ;;  %s2013_s1 = inlined_call_operand.vmem [shape: bf16[5,4,36], index: 1, kind: input, shape index: {}]   ;;  %s2014_s2 = inlined_call_operand.vmem [shape: bf16[9,4,128], index: 2, kind: output, shape index: {0}]   ;;  %s2015_s3 = inlined_call_operand.vmem [shape: bf16[9,4,128], index: 3, kind: output, shape index: {1}]   ;;  %s2016_s4 = inlined_call_operand.vmem [shape: f32[3,4,2], index: 4, kind: output, shape index: {2}]  }
   0x1 LB: > { %s1745_s16 = sadd.s32 4294967295, %s1706_s15   ;;  %p1359_p0 = scmp.ge.s32.totalorder %s1706_s15, 1  ;;  %s1706_s15 = sphi %s1739_s15, %s15_s15  }
   0x2   : > { %p169_p1 = scmp.lt.s32.totalorder %s1706_s15, 4 }
   0x4   : > { %p170_p2 = pnand %p1359_p0, %p169_p1 }
   0x5   : > { %s205_s17 = smul.u32 (!%p170_p2), 3, %s1745_s16  ;;  %v1708_v0 = vmov (!%p170_p2), 0.0   ;;  %vm1709_vm0 = vmmov (!%p170_p2), 0   ;;  %vm254_vm1 = vcmask (!%p170_p2), 1041408   ;;  %v234_v5 = vld [vmem:[%s2013_s1] sm:$0x3] (!%p170_p2) }
   0x6   : > { %173 = sbr.rel (%p170_p2) target bundleno = 602 (0x25a), region = 28  ;;  %1506 = vmatprep.subr.bf16.mxu0 (!%p170_p2), %v1708_v0  ;;  %1516 = vmatprep.subr.bf16.mxu1 (!%p170_p2), %v1708_v0  ;;  %vm250_vm2 = vcmask (!%p170_p2), 293888   ;;  %v1368_v6 = vld [vmem:[%s2013_s1 + $0x2] sm:$0x3] (!%p170_p2)  ;;  %v1370_v7 = vld [vmem:[%s2013_s1 + $0x4] sm:$0x3] (!%p170_p2) }
   0x7   : > { %p206_p3 = scmp.lt.s32.totalorder (!%p170_p2), %s205_s17, 8  ;;  %1512 = vmatprep.mubr.msk.bf16.mxu0 (!%p170_p2), %vm1709_vm0, %v1708_v0  ;;  %1522 = vmatprep.mubr.msk.bf16.mxu1 (!%p170_p2), %vm1709_vm0, %v1708_v0  ;;  %v1372_v8 = vld [vmem:[%s2013_s1 + $0x6] sm:$0x3] (!%p170_p2)  ;;  %v1374_v13 = vld [vmem:[%s2013_s1 + $0x8] sm:$0x3] (!%p170_p2)  ;;  %s1710_s30 = smov (!%p170_p2), 124  }
   0x8   : > { %v572_v14 = vld [vmem:[%s2013_s1] sm:$0x3] (!%p170_p2)  ;;  %v1389_v15 = vld [vmem:[%s2013_s1 + $0x2] sm:$0x3] (!%p170_p2)  ;;  %v1391_v16 = vld [vmem:[%s2013_s1 + $0x4] sm:$0x3] (!%p170_p2) }
   0x9   : > { %v1393_v17 = vld [vmem:[%s2013_s1 + $0x6] sm:$0x3] (!%p170_p2)  ;;  %v1395_v18 = vld [vmem:[%s2013_s1 + $0x8] sm:$0x3] (!%p170_p2)  ;;  %v904_v23 = vld [vmem:[%s2013_s1] sm:$0x3] (!%p170_p2) }
   0xa   : > { %v1421_v24 = vld [vmem:[%s2013_s1 + $0x2] sm:$0x3] (!%p170_p2)  ;;  %v1423_v25 = vld [vmem:[%s2013_s1 + $0x4] sm:$0x3] (!%p170_p2)  ;;  %v1425_v26 = vld [vmem:[%s2013_s1 + $0x6] sm:$0x3] (!%p170_p2) }
   0xb   : > { %v1427_v27 = vld [vmem:[%s2013_s1 + $0x8] sm:$0x3] (!%p170_p2)  ;;  %s1711_s5 = smov (!%p170_p2), 120   ;;  %s1712_s6 = smov (!%p170_p2), 116   ;;  %vm502_vm3 = vcmask (!%p170_p2), 158720   ;;  %vm500_vm4 = vcmask (!%p170_p2), 156672  }
   0xc   : > { %s1713_s7 = smov (!%p170_p2), 112   ;;  %p224_p4 = scmp.lt.s32.totalorder (!%p170_p2), %s1745_s16, 2  ;;  %vm1230_vm5 = vcmask (!%p170_p2), 7168   ;;  %vm1232_vm6 = vcmask (!%p170_p2), 11264  }
   0xd   : > { %s2018_s17 = smov (!%p206_p3, %s205_s17), 8 }
   0xe   : > { %s1656_s18 = smul.u32 20, %s2018_s17  ;;  %s2020_s16 = smov (!%p224_p4, %s1745_s16), 2 }
  0x10   : > { %s1762_s21 = scalar_lea.vmem %s2012_s0, %s1656_s18 }
  0x11   : > { %v1691_v1 = vld [vmem:[%s1762_s21] sm:$0xff]   ;;  %v1692_v2 = vld [vmem:[%s1762_s21 + $0x8] sm:$0xff]   ;;  %v1693_v3 = vld [vmem:[%s1762_s21 + $0x10] ss:$0 sps:$4 sm:$0x33]  }
  0x12   : > { %1507 = vmatpush3.bf16.msra.mxu0 %v1691_v1  ;;  %1517 = vmatpush3.bf16.msra.mxu1 %v1691_v1  ;;  %v256_v4 = vsel %vm254_vm1, %v1693_v3, 0  ;;  %v1694_v9 = vld [vmem:[%s1762_s21 + $0x14] sm:$0xff]   ;;  %v1695_v10 = vld [vmem:[%s1762_s21 + $0x1c] sm:$0xff]   ;;  %v1696_v11 = vld [vmem:[%s1762_s21 + $0x24] ss:$0 sps:$4 sm:$0x33]  }
  0x13   : > { %1508 = vmatprep.subr.bf16.mxu0 %v1708_v0  ;;  %1518 = vmatprep.subr.bf16.mxu1 %v1708_v0  ;;  %v592_v12 = vsel %vm254_vm1, %v1696_v11, 0  ;;  %v1697_v19 = vld [vmem:[%s1762_s21 + $0x28] sm:$0xff]   ;;  %v1698_v20 = vld [vmem:[%s1762_s21 + $0x30] sm:$0xff]   ;;  %v1699_v21 = vld [vmem:[%s1762_s21 + $0x38] ss:$0 sps:$4 sm:$0x33]  }
  0x14   : > { %v924_v22 = vsel %vm254_vm1, %v1699_v21, 0  ;;  %v513_v60 = vld [vmem:[%s1762_s21] sm:$0xc]  ;;  %v515_v61 = vld [vmem:[%s1762_s21 + $0x4] sm:$0xc] }
  0x15   : > { %v517_v62 = vld [vmem:[%s1762_s21 + $0x8] sm:$0xc]  ;;  %v519_v63 = vld [vmem:[%s1762_s21 + $0xc] sm:$0xc]  ;;  %v1401_v3 = vld [vmem:[%s1762_s21 + $0x18] sm:$0xc] }
  0x16   : > { %1509 = vmatpush3.bf16.msra.mxu0 %v1692_v2  ;;  %1519 = vmatpush3.bf16.msra.mxu1 %v1692_v2  ;;  %v1379_v11 = vrot.slane %v519_v63, 10  ;;  %v1436_v63 = vld [vmem:[%s1762_s21 + $0x34] sm:$0x3] }
  0x17   : > { %1510 = vmatprep.subr.bf16.mxu0 %v1708_v0  ;;  %1520 = vmatprep.subr.bf16.mxu1 %v1708_v0 }
  0x1a   : > { %1511 = vmatpush3.bf16.msra.mxu0 %v256_v4  ;;  %1521 = vmatpush3.bf16.msra.mxu1 %v256_v4 }
  0x1b   : > { %1526 = vmatprep.subr.bf16.mxu0 %v1708_v0  ;;  %1536 = vmatprep.subr.bf16.mxu1 %v1708_v0 }
  0x1d   : > { %1513 = vmatmul.mubr.msk.bf16.vlgmr.msra.gmra.mrb[0].mxu0 %vm250_vm2, %v234_v5  ;;  %1523 = vmatmul.mubr.msk.bf16.vlgmr.msra.gmra.mrb[0].mxu1 %vm250_vm2, %v1368_v6  ;;  %v1405_v5 = vld [vmem:[%s1762_s21 + $0x20] sm:$0xc]  ;;  %v512_v6 = vld [vmem:[%s1762_s21] sm:$0x3] }
  0x1e   : > { %1527 = vmatpush3.bf16.msra.mxu0 %v1691_v1  ;;  %1537 = vmatpush3.bf16.msra.mxu1 %v1691_v1  ;;  %v1410_v21 = vrot.slane %v1405_v5, 10 }
  0x1f   : > { %1528 = vmatprep.subr.bf16.mxu0 %v1708_v0  ;;  %1538 = vmatprep.subr.bf16.mxu1 %v1708_v0 }
  0x20   : > { %1532 = vmatprep.mubr.msk.bf16.mxu0 %vm1709_vm0, %v1708_v0  ;;  %1542 = vmatprep.mubr.msk.bf16.mxu1 %vm1709_vm0, %v1708_v0 }
  0x22   : > { %1529 = vmatpush3.bf16.msra.mxu0 %v1692_v2  ;;  %1539 = vmatpush3.bf16.msra.mxu1 %v1692_v2 }
  0x23   : > { %1530 = vmatprep.subr.bf16.mxu0 %v1708_v0  ;;  %1540 = vmatprep.subr.bf16.mxu1 %v1708_v0 }
  0x26   : > { %1531 = vmatpush3.bf16.msra.mxu0 %v256_v4  ;;  %1541 = vmatpush3.bf16.msra.mxu1 %v256_v4 }
  0x27   : > { %1546 = vmatprep.subr.bf16.mxu0 %v1708_v0  ;;  %1556 = vmatprep.subr.bf16.mxu1 %v1708_v0 }
  0x29   : > { %1533 = vmatmul.mubr.msk.bf16.vlgmr.msra.gmra.mrb[4].mxu0 %vm250_vm2, %v1370_v7  ;;  %1543 = vmatmul.mubr.msk.bf16.vlgmr.msra.gmra.mrb[4].mxu1 %vm250_vm2, %v1372_v8  ;;  %v514_v7 = vld [vmem:[%s1762_s21 + $0x4] sm:$0x3]  ;;  %v516_v8 = vld [vmem:[%s1762_s21 + $0x8] sm:$0x3] }
  0x2a   : > { %1547 = vmatpush3.bf16.msra.mxu0 %v1691_v1  ;;  %1557 = vmatpush3.bf16.msra.mxu1 %v1694_v9  ;;  %v1377_v1 = vrot.slane %v515_v61, 10 }
  0x2b   : > { %1548 = vmatprep.subr.bf16.mxu0 %v1708_v0  ;;  %1558 = vmatprep.subr.bf16.mxu1 %v1708_v0 }
  0x2c   : > { %1552 = vmatprep.mubr.msk.bf16.mxu0 %vm1709_vm0, %v1708_v0  ;;  %1562 = vmatprep.mubr.msk.bf16.mxu1 %vm1709_vm0, %v1708_v0 }
  0x2e   : > { %1549 = vmatpush3.bf16.msra.mxu0 %v1692_v2  ;;  %1559 = vmatpush3.bf16.msra.mxu1 %v1695_v10  ;;  %v1399_v2 = vld [vmem:[%s1762_s21 + $0x14] sm:$0xc] }
  0x2f   : > { %1550 = vmatprep.subr.bf16.mxu0 %v1708_v0  ;;  %1560 = vmatprep.subr.bf16.mxu1 %v1708_v0 }
  0x32   : > { %1551 = vmatpush3.bf16.msra.mxu0 %v256_v4  ;;  %1561 = vmatpush3.bf16.msra.mxu1 %v592_v12  ;;  %v1403_v4 = vld [vmem:[%s1762_s21 + $0x1c] sm:$0xc] }
  0x33   : > { %1566 = vmatprep.subr.bf16.mxu0 %v1708_v0  ;;  %1576 = vmatprep.subr.bf16.mxu1 %v1708_v0 }
  0x35   : > { %1553 = vmatmul.mubr.msk.bf16.vlgmr.msra.gmra.mrb[8].mxu0 %vm250_vm2, %v1374_v13  ;;  %1563 = vmatmul.mubr.msk.bf16.vlgmr.msra.gmra.mrb[8].mxu1 %vm250_vm2, %v572_v14  ;;  %v1398_v14 = vld [vmem:[%s1762_s21 + $0x14] sm:$0x3] }
  0x36   : > { %1567 = vmatpush3.bf16.msra.mxu0 %v1694_v9  ;;  %1577 = vmatpush3.bf16.msra.mxu1 %v1694_v9 }
  0x37   : > { %1568 = vmatprep.subr.bf16.mxu0 %v1708_v0  ;;  %1578 = vmatprep.subr.bf16.mxu1 %v1708_v0 }
  0x38   : > { %1572 = vmatprep.mubr.msk.bf16.mxu0 %vm1709_vm0, %v1708_v0  ;;  %1582 = vmatprep.mubr.msk.bf16.mxu1 %vm1709_vm0, %v1708_v0 }
  0x3a   : > { %1569 = vmatpush3.bf16.msra.mxu0 %v1695_v10  ;;  %1579 = vmatpush3.bf16.msra.mxu1 %v1695_v10 }
  0x3b   : > { %1570 = vmatprep.subr.bf16.mxu0 %v1708_v0  ;;  %1580 = vmatprep.subr.bf16.mxu1 %v1708_v0 }
  0x3e   : > { %1571 = vmatpush3.bf16.msra.mxu0 %v592_v12  ;;  %1581 = vmatpush3.bf16.msra.mxu1 %v592_v12 }
  0x3f   : > { %1586 = vmatprep.subr.bf16.mxu0 %v1708_v0  ;;  %1596 = vmatprep.subr.bf16.mxu1 %v1708_v0 }
  0x41   : > { %1573 = vmatmul.mubr.msk.bf16.vlgmr.msra.gmra.mrb[12].mxu0 %vm250_vm2, %v1389_v15  ;;  %1583 = vmatmul.mubr.msk.bf16.vlgmr.msra.gmra.mrb[12].mxu1 %vm250_vm2, %v1391_v16  ;;  %v1400_v15 = vld [vmem:[%s1762_s21 + $0x18] sm:$0x3] }
  0x42   : > { %1587 = vmatpush3.bf16.msra.mxu0 %v1694_v9  ;;  %1597 = vmatpush3.bf16.msra.mxu1 %v1694_v9  ;;  %v518_v9 = vld [vmem:[%s1762_s21 + $0xc] sm:$0x3] }
  0x43   : > { %1588 = vmatprep.subr.bf16.mxu0 %v1708_v0  ;;  %1598 = vmatprep.subr.bf16.mxu1 %v1708_v0 }
  0x44   : > { %1592 = vmatprep.mubr.msk.bf16.mxu0 %vm1709_vm0, %v1708_v0  ;;  %1602 = vmatprep.mubr.msk.bf16.mxu1 %vm1709_vm0, %v1708_v0 }
  0x46   : > { %1589 = vmatpush3.bf16.msra.mxu0 %v1695_v10  ;;  %1599 = vmatpush3.bf16.msra.mxu1 %v1695_v10  ;;  %v1378_v10 = vrot.slane %v517_v62, 10  ;;  %v1434_v62 = vld [vmem:[%s1762_s21 + $0x30] sm:$0x3] }
  0x47   : > { %1590 = vmatprep.subr.bf16.mxu0 %v1708_v0  ;;  %1600 = vmatprep.subr.bf16.mxu1 %v1708_v0 }
  0x4a   : > { %1591 = vmatpush3.bf16.msra.mxu0 %v592_v12  ;;  %1601 = vmatpush3.bf16.msra.mxu1 %v592_v12 }
  0x4b   : > { %1606 = vmatprep.subr.bf16.mxu0 %v1708_v0  ;;  %1616 = vmatprep.subr.bf16.mxu1 %v1708_v0 }
  0x4d   : > { %1593 = vmatmul.mubr.msk.bf16.vlgmr.msra.gmra.mrb[16].mxu0 %vm250_vm2, %v1393_v17  ;;  %1603 = vmatmul.mubr.msk.bf16.vlgmr.msra.gmra.mrb[16].mxu1 %vm250_vm2, %v1395_v18  ;;  %v1407_v18 = vrot.slane %v1399_v2, 10 }
  0x4e   : > { %1607 = vmatpush3.bf16.msra.mxu0 %v1697_v19  ;;  %1617 = vmatpush3.bf16.msra.mxu1 %v1697_v19 }
  0x4f   : > { %1608 = vmatprep.subr.bf16.mxu0 %v1708_v0  ;;  %1618 = vmatprep.subr.bf16.mxu1 %v1708_v0 }
  0x50   : > { %1612 = vmatprep.mubr.msk.bf16.mxu0 %vm1709_vm0, %v1708_v0  ;;  %1622 = vmatprep.mubr.msk.bf16.mxu1 %vm1709_vm0, %v1708_v0 }
  0x52   : > { %1609 = vmatpush3.bf16.msra.mxu0 %v1698_v20  ;;  %1619 = vmatpush3.bf16.msra.mxu1 %v1698_v20 }
  0x53   : > { %1610 = vmatprep.subr.bf16.mxu0 %v1708_v0  ;;  %1620 = vmatprep.subr.bf16.mxu1 %v1708_v0 }
  0x56   : > { %1611 = vmatpush3.bf16.msra.mxu0 %v924_v22  ;;  %1621 = vmatpush3.bf16.msra.mxu1 %v924_v22 }
  0x57   : > { %1626 = vmatprep.subr.bf16.mxu0 %v1708_v0  ;;  %1636 = vmatprep.subr.bf16.mxu1 %v1708_v0 }
  0x59   : > { %1613 = vmatmul.mubr.msk.bf16.vlgmr.msra.gmra.mrb[20].mxu0 %vm250_vm2, %v904_v23  ;;  %1623 = vmatmul.mubr.msk.bf16.vlgmr.msra.gmra.mrb[20].mxu1 %vm250_vm2, %v1421_v24  ;;  %v1402_v24 = vld [vmem:[%s1762_s21 + $0x1c] sm:$0x3] }
  0x5a   : > { %1627 = vmatpush3.bf16.msra.mxu0 %v1697_v19  ;;  %1637 = vmatpush3.bf16.msra.mxu1 %v1697_v19 }
  0x5b   : > { %1628 = vmatprep.subr.bf16.mxu0 %v1708_v0  ;;  %1638 = vmatprep.subr.bf16.mxu1 %v1708_v0 }
  0x5c   : > { %1632 = vmatprep.mubr.msk.bf16.mxu0 %vm1709_vm0, %v1708_v0  ;;  %1642 = vmatprep.mubr.msk.bf16.mxu1 %vm1709_vm0, %v1708_v0 }
  0x5e   : > { %1629 = vmatpush3.bf16.msra.mxu0 %v1698_v20  ;;  %1639 = vmatpush3.bf16.msra.mxu1 %v1698_v20 }
  0x5f   : > { %1630 = vmatprep.subr.bf16.mxu0 %v1708_v0  ;;  %1640 = vmatprep.subr.bf16.mxu1 %v1708_v0 }
  0x62   : > { %1631 = vmatpush3.bf16.msra.mxu0 %v924_v22  ;;  %1641 = vmatpush3.bf16.msra.mxu1 %v924_v22 }
  0x63   : > { %1646 = vmatprep.subr.bf16.mxu0 %v1708_v0 }
  0x65   : > { %1633 = vmatmul.mubr.msk.bf16.vlgmr.msra.gmra.mrb[24].mxu0 %vm250_vm2, %v1423_v25  ;;  %1643 = vmatmul.mubr.msk.bf16.vlgmr.msra.gmra.mrb[24].mxu1 %vm250_vm2, %v1425_v26  ;;  %v1404_v25 = vld [vmem:[%s1762_s21 + $0x20] sm:$0x3] }
  0x66   : > { %1647 = vmatpush3.bf16.msra.mxu0 %v1697_v19  ;;  %1652 = vmatprep.mubr.msk.bf16.mxu0 %vm1709_vm0, %v1708_v0  ;;  %v1408_v19 = vrot.slane %v1401_v3, 10 }
  0x67   : > { %1648 = vmatprep.subr.bf16.mxu0 %v1708_v0 }
  0x6a   : > { %1649 = vmatpush3.bf16.msra.mxu0 %v1698_v20  ;;  %v1409_v20 = vrot.slane %v1403_v4, 10 }
  0x6b   : > { %1650 = vmatprep.subr.bf16.mxu0 %v1708_v0  ;;  %v1376_v0 = vrot.slane %v513_v60, 10 }
  0x6e   : > { %1651 = vmatpush3.bf16.msra.mxu0 %v924_v22 }
  0x71   : > { %1653 = vmatmul.mubr.msk.bf16.vlgmr.msra.gmra.mrb[28].mxu0 %vm250_vm2, %v1427_v27 }
  0xf0   : > { %v1905_v28 = vpop.f32.mrb[0].mxu0  ;;  %v337_v29 = vpop.f32.mrb[0].mxu1 }
  0xf1   : > { %344 = vrot.lane.b32.xlu0 %v337_v29, %s1710_s30  ;;  %v1514_v30 = vpop.f32.mrb[1].mxu0  ;;  %v1524_v31 = vpop.f32.mrb[1].mxu1  ;;  %v525_v29 = vmax.bf16 %v1376_v0, %v512_v6 }
  0xf2   : > { %v295_v32 = vpop.f32.mrb[2].mxu0  ;;  %v340_v33 = vpop.f32.mrb[2].mxu1  ;;  %v530_v30 = vmax.bf16 %v1377_v1, %v514_v7  ;;  %v535_v31 = vmax.bf16 %v1378_v10, %v516_v8 }
  0xf3   : > { %v1515_v34 = vpop.f32.mrb[3].mxu0  ;;  %v1525_v35 = vpop.f32.mrb[3].mxu1  ;;  %v540_v32 = vmax.bf16 %v1379_v11, %v518_v9  ;;  %v856_v33 = vmax.bf16 %v1407_v18, %v1398_v14 }
  0xf4   : > { %v861_v34 = vmax.bf16 %v1408_v19, %v1400_v15  ;;  %v866_v35 = vmax.bf16 %v1409_v20, %v1402_v24  ;;  %v1438_v20 = vld [vmem:[%s1762_s21 + $0x38] sm:$0x3] }
  0xfc   : > { %v387_v36 = vpop.f32.mrb[4].mxu0  ;;  %v437_v37 = vpop.f32.mrb[4].mxu1 }
  0xfd   : > { %394 = vrot.lane.b32.xlu1 %v387_v36, %s1711_s5  ;;  %v1534_v38 = vpop.f32.mrb[5].mxu0  ;;  %v1544_v39 = vpop.f32.mrb[5].mxu1  ;;  %v871_v36 = vmax.bf16 %v1410_v21, %v1404_v25 }
  0xfe   : > { %v390_v40 = vpop.f32.mrb[6].mxu0  ;;  %v440_v41 = vpop.f32.mrb[6].mxu1  ;;  %v542_v38 = vmax.bf16 %v540_v32, %v535_v31  ;;  %v872_v39 = vmax.bf16 %v861_v34, %v856_v33 }
  0xff   : > { %v1535_v42 = vpop.f32.mrb[7].mxu0  ;;  %v1545_v43 = vpop.f32.mrb[7].mxu1  ;;  %v873_v40 = vmax.bf16 %v871_v36, %v866_v35  ;;  %v1431_v41 = vld [vmem:[%s1762_s21 + $0x28] sm:$0xc] }
 0x100   : > { %v1433_v42 = vld [vmem:[%s1762_s21 + $0x2c] sm:$0xc]  ;;  %v1435_v43 = vld [vmem:[%s1762_s21 + $0x30] sm:$0xc] }
 0x101   : > { %444 = vrot.lane.b32.xlu1 %v437_v37, %s1712_s6  ;;  %v541_v37 = vmax.bf16 %v530_v30, %v525_v29 }
 0x108   : > { %v487_v44 = vpop.f32.mrb[8].mxu0  ;;  %v1910_v45 = vpop.f32.mrb[8].mxu1 }
 0x109   : > { %494 = vrot.lane.b32.xlu0 %v487_v44, %s1713_s7  ;;  %v1554_v46 = vpop.f32.mrb[9].mxu0  ;;  %v1564_v47 = vpop.f32.mrb[9].mxu1  ;;  %v1437_v44 = vld [vmem:[%s1762_s21 + $0x34] sm:$0xc] }
 0x10a   : > { %v490_v48 = vpop.f32.mrb[10].mxu0  ;;  %v631_v49 = vpop.f32.mrb[10].mxu1  ;;  %v520_v46 = vld [vmem:[%s1762_s21 + $0x10] sm:$0x3]  ;;  %v1430_v47 = vld [vmem:[%s1762_s21 + $0x28] sm:$0x3] }
 0x10b   : > { %v1555_v50 = vpop.f32.mrb[11].mxu0  ;;  %v1565_v51 = vpop.f32.mrb[11].mxu1 }
 0x10c   : > { %v543_v50 = vmax.bf16 %v542_v38, %v541_v37  ;;  %v1406_v51 = vld [vmem:[%s1762_s21 + $0x24] sm:$0x3] }
 0x10e   : > { %v544_v2 = vmax.bf16 %v543_v50, %v520_v46 }
 0x110   : > { %v1946_v8 = vunpack.c.l.bf16 %v544_v2 }
 0x114   : > { %v672_v52 = vpop.f32.mrb[12].mxu0  ;;  %v721_v53 = vpop.f32.mrb[12].mxu1 }
 0x115   : > { %679 = vrot.lane.b32.xlu0 %v672_v52, %s1710_s30  ;;  %v1574_v54 = vpop.f32.mrb[13].mxu0  ;;  %728 = vrot.lane.b32.xlu1 %v721_v53, %s1711_s5  ;;  %v1584_v55 = vpop.f32.mrb[13].mxu1  ;;  %v1432_v52 = vld [vmem:[%s1762_s21 + $0x2c] sm:$0x3]  ;;  %v1439_v53 = vrot.slane %v1431_v41, 10  ;;  %s1361_s21 = sshll.u32 %s2018_s17, 1 }
 0x116   : > { %v675_v56 = vpop.f32.mrb[14].mxu0  ;;  %v724_v57 = vpop.f32.mrb[14].mxu1  ;;  %s1974_s10 = scalar_lea.vmem %s2014_s2, %s1361_s21  ;;  %s222_s13 = scalar_lea.vmem %s2015_s3, %s1361_s21 }
 0x117   : > { %v1575_v58 = vpop.f32.mrb[15].mxu0  ;;  %v1585_v59 = vpop.f32.mrb[15].mxu1  ;;  %v874_v56 = vmax.bf16 %v873_v40, %v872_v39  ;;  %v1440_v57 = vrot.slane %v1433_v42, 10  ;;  %v1188_v3 = vmax.bf16 %v1439_v53, %v1430_v47  ;;  %s1363_s17 = sshll.u32 %s2020_s16, 2 }
 0x118   : > { %v1441_v58 = vrot.slane %v1435_v43, 10  ;;  %v1442_v59 = vrot.slane %v1437_v44, 10  ;;  %s227_s19 = scalar_lea.vmem %s2016_s4, %s1363_s17 }
 0x119   : > { %v875_v4 = vmax.bf16 %v1406_v51, %v874_v56  ;;  %v1193_v5 = vmax.bf16 %v1440_v57, %v1432_v52 }
 0x11a   : > { %v1198_v6 = vmax.bf16 %v1441_v58, %v1434_v62  ;;  %v1203_v7 = vmax.bf16 %v1442_v59, %v1436_v63 }
 0x11b   : > { %v1948_v9 = vunpack.c.l.bf16 %v875_v4  ;;  %v1204_v10 = vmax.bf16 %v1193_v5, %v1188_v3 }
 0x11c   : > { %v1205_v11 = vmax.bf16 %v1203_v7, %v1198_v6 }
 0x120   : > { %v770_v12 = vpop.f32.mrb[16].mxu0  ;;  %v819_v13 = vpop.f32.mrb[16].mxu1 }
 0x121   : > { %777 = vrot.lane.b32.xlu0 %v770_v12, %s1712_s6  ;;  %v1594_v16 = vpop.f32.mrb[17].mxu0  ;;  %826 = vrot.lane.b32.xlu1 %v819_v13, %s1713_s7  ;;  %v1604_v17 = vpop.f32.mrb[17].mxu1 }
 0x122   : > { %v773_v22 = vpop.f32.mrb[18].mxu0  ;;  %v822_v23 = vpop.f32.mrb[18].mxu1  ;;  %v1671_v16 = vpack.i.bf16 %v1948_v9, %v1946_v8  ;;  %v1206_v17 = vmax.bf16 %v1205_v11, %v1204_v10 }
 0x123   : > { %v1595_v26 = vpop.f32.mrb[19].mxu0  ;;  %v1605_v27 = vpop.f32.mrb[19].mxu1 }
 0x124   : > { %v1207_v23 = vmax.bf16 %v1438_v20, %v1206_v17 }
 0x126   : > { %v1957_v24 = vunpack.c.l.bf16 %v1207_v23 }
 0x12c   : > { %v1939_v48 = vpop.f32.mrb[20].mxu0  ;;  %v1004_v49 = vpop.f32.mrb[20].mxu1 }
 0x12d   : > { %1011 = vrot.lane.b32.xlu0 %v1004_v49, %s1710_s30  ;;  %v1614_v54 = vpop.f32.mrb[21].mxu0  ;;  %v1624_v55 = vpop.f32.mrb[21].mxu1 }
 0x12e   : > { %v963_v60 = vpop.f32.mrb[22].mxu0  ;;  %v1007_v61 = vpop.f32.mrb[22].mxu1 }
 0x12f   : > { %v1615_v0 = vpop.f32.mrb[23].mxu0  ;;  %v1625_v1 = vpop.f32.mrb[23].mxu1 }
 0x138   : > { %v1053_v12 = vpop.f32.mrb[24].mxu0  ;;  %v1102_v13 = vpop.f32.mrb[24].mxu1 }
 0x139   : > { %1060 = vrot.lane.b32.xlu1 %v1053_v12, %s1711_s5  ;;  %v1634_v14 = vpop.f32.mrb[25].mxu0  ;;  %1109 = vrot.lane.b32.xlu0 %v1102_v13, %s1712_s6  ;;  %v1644_v15 = vpop.f32.mrb[25].mxu1 }
 0x13a   : > { %v1056_v18 = vpop.f32.mrb[26].mxu0  ;;  %v1105_v19 = vpop.f32.mrb[26].mxu1 }
 0x13b   : > { %v1635_v21 = vpop.f32.mrb[27].mxu0  ;;  %v1645_v22 = vpop.f32.mrb[27].mxu1 }
 0x13d   : > { %1672 = vrot.lane.b32.xlu0 %v1671_v16, %s1710_s30 }
 0x141   : > { %1677 = vrot.lane.b32.xlu0 %v1671_v16, %s1711_s5 }
 0x144   : > { %v1151_v25 = vpop.f32.mrb[28].mxu0 }
 0x145   : > { %1158 = vrot.lane.b32.xlu1 %v1151_v25, %s1713_s7  ;;  %v1654_v26 = vpop.f32.mrb[29].mxu0  ;;  %1214 = vrot.lane.b32.xlu0 %v1957_v24, %s1711_s5 }
 0x146   : > { %v1154_v27 = vpop.f32.mrb[30].mxu0 }
 0x147   : > { %v1655_v29 = vpop.f32.mrb[31].mxu0 }
 0x149   : > { %1682 = vrot.lane.b32.xlu0 %v1671_v16, %s1712_s6  ;;  %1210 = vrot.lane.b32.xlu1 %v1957_v24, %s1710_s30 }
 0x14d   : > { %1218 = vrot.lane.b32.xlu0 %v1957_v24, %s1712_s6 }
 0x163   : > { %v345_v31 = vpop.permute.xlu0 %344 }
 0x164   : > { %v347_v32 = vadd.f32 %v345_v31, %v1905_v28 }
 0x16f   : > { %v395_v30 = vpop.permute.xlu1 %394 }
 0x170   : > { %v397_v34 = vadd.f32 %v395_v30, %v347_v32 }
 0x173   : > { %v445_v33 = vpop.permute.xlu1 %444 }
 0x174   : > { %v447_v35 = vadd.f32 %v445_v33, %v397_v34 }
 0x17b   : > { %v495_v36 = vpop.permute.xlu0 %494 }
 0x17c   : > { %v497_v37 = vadd.f32 %v495_v36, %v447_v35 }
 0x17e   : > { %v498_v38 = vmax.f32 %v497_v37, 0.0 }
 0x180   : > { %v499_v39 = vpack.c.bf16 %v498_v38, %v498_v38  ;;  %v503_v40 = vsel %vm502_vm3, %v498_v38, 0.0  ;;  %v507_v28 = vmul.f32 %v498_v38, %v498_v38 }
 0x181   : > { %504 = vadd.xlane.f32.xlu0 %v503_v40 }
 0x182   : > { %v508_v41 = vsel %vm502_vm3, %v507_v28, 0.0  ;;  %501 = vst.msk [vmem:[%s1974_s10] sm:$0x3] %vm500_vm4, %v499_v39 }
 0x183   : > { %509 = vadd.xlane.f32.xlu1 %v508_v41 }
 0x187   : > { %v680_v42 = vpop.permute.xlu0 %679  ;;  %v729_v44 = vpop.permute.xlu1 %728 }
 0x188   : > { %v682_v43 = vadd.f32 %v680_v42, %v1910_v45 }
 0x18a   : > { %v731_v46 = vadd.f32 %v729_v44, %v682_v43 }
 0x193   : > { %v778_v47 = vpop.permute.xlu0 %777  ;;  %v827_v49 = vpop.permute.xlu1 %826 }
 0x194   : > { %v780_v50 = vadd.f32 %v778_v47, %v731_v46 }
 0x196   : > { %v829_v51 = vadd.f32 %v827_v49, %v780_v50 }
 0x197   : > { %1687 = vrot.lane.b32.xlu0 %v1671_v16, %s1713_s7 }
 0x198   : > { %v830_v52 = vmax.f32 %v829_v51, 0.0 }
 0x19a   : > { %v831_v53 = vpack.c.bf16 %v830_v52, %v830_v52  ;;  %v834_v54 = vsel %vm502_vm3, %v830_v52, 0.0  ;;  %v838_v55 = vmul.f32 %v830_v52, %v830_v52 }
 0x19b   : > { %835 = vadd.xlane.f32.xlu1 %v834_v54 }
 0x19c   : > { %1397 = vst.msk [vmem:[%s1974_s10 + $0x2] sm:$0x3] %vm500_vm4, %v831_v53  ;;  %v839_v56 = vsel %vm502_vm3, %v838_v55, 0.0 }
 0x19f   : > { %840 = vadd.xlane.f32.xlu1 %v839_v56  ;;  %v1012_v45 = vpop.permute.xlu0 %1011 }
 0x1a0   : > { %v1014_v58 = vadd.f32 %v1012_v45, %v1939_v48 }
 0x1ab   : > { %v1061_v57 = vpop.permute.xlu1 %1060  ;;  %v1110_v60 = vpop.permute.xlu0 %1109 }
 0x1ac   : > { %v1063_v59 = vadd.f32 %v1061_v57, %v1014_v58 }
 0x1ae   : > { %v1112_v61 = vadd.f32 %v1110_v60, %v1063_v59 }
 0x1af   : > { %v1673_v48 = vpop.permute.xlu0 %1672 }
 0x1b0   : > { %v1675_v10 = vunpack.i.h.bf16 %v1673_v48  ;;  %v1674_v11 = vunpack.i.l.bf16 %v1673_v48 }
 0x1b2   : > { %v881_v13 = vmax.f32 %v1948_v9, %v1675_v10  ;;  %v550_v14 = vmax.f32 %v1946_v8, %v1674_v11 }
 0x1b3   : > { %v1678_v5 = vpop.permute.xlu0 %1677 }
 0x1b4   : > { %v1680_v15 = vunpack.i.h.bf16 %v1678_v5  ;;  %v1679_v16 = vunpack.i.l.bf16 %v1678_v5 }
 0x1b6   : > { %v554_v18 = vmax.f32 %v550_v14, %v1679_v16  ;;  %v885_v19 = vmax.f32 %v881_v13, %v1680_v15 }
 0x1b7   : > { %v1159_v62 = vpop.permute.xlu1 %1158  ;;  %v1215_v6 = vpop.permute.xlu0 %1214 }
 0x1b8   : > { %v1161_v63 = vadd.f32 %v1159_v62, %v1112_v61 }
 0x1ba   : > { %v1162_v0 = vmax.f32 %v1161_v63, 0.0 }
 0x1bb   : > { %v1683_v7 = vpop.permute.xlu0 %1682  ;;  %v1211_v33 = vpop.permute.xlu1 %1210 }
 0x1bc   : > { %v1163_v1 = vpack.c.bf16 %v1162_v0, %v1162_v0  ;;  %v1166_v2 = vsel %vm502_vm3, %v1162_v0, 0.0  ;;  %v1170_v3 = vmul.f32 %v1162_v0, %v1162_v0  ;;  %v1685_v20 = vunpack.i.h.bf16 %v1683_v7 }
 0x1bd   : > { %1167 = vadd.xlane.f32.xlu1 %v1166_v2  ;;  %v1684_v21 = vunpack.i.l.bf16 %v1683_v7  ;;  %v1213_v37 = vmax.f32 %v1957_v24, %v1211_v33 }
 0x1be   : > { %v1171_v4 = vsel %vm502_vm3, %v1170_v3, 0.0  ;;  %1429 = vst.msk [vmem:[%s1974_s10 + $0x4] sm:$0x3] %vm500_vm4, %v1163_v1  ;;  %v889_v25 = vmax.f32 %v885_v19, %v1685_v20 }
 0x1bf   : > { %v1219_v12 = vpop.permute.xlu0 %1218  ;;  %v558_v23 = vmax.f32 %v554_v18, %v1684_v21  ;;  %v1217_v39 = vmax.f32 %v1213_v37, %v1215_v6 }
 0x1c1   : > { %1172 = vadd.xlane.f32.xlu1 %v1171_v4  ;;  %v1221_v44 = vmax.f32 %v1217_v39, %v1219_v12 }
 0x1d2   : > { %1222 = vrot.lane.b32.xlu1 %v1957_v24, %s1713_s7 }
 0x20e   : > { %v505_v17 = vpop.xlane.xlu0 %504 }
 0x210   : > { %v510_v34 = vpop.xlane.xlu1 %509 }
 0x212   : > { %v1688_v22 = vpop.permute.xlu0 %1687 }
 0x213   : > { %v1690_v26 = vunpack.i.h.bf16 %v1688_v22  ;;  %v1689_v27 = vunpack.i.l.bf16 %v1688_v22 }
 0x215   : > { %v562_v29 = vmax.f32 %v558_v23, %v1689_v27  ;;  %v893_v30 = vmax.f32 %v889_v25, %v1690_v26 }
 0x217   : > { %v563_v9 = vmax.f32 %v562_v29, 0.0  ;;  %v894_v31 = vmax.f32 %v893_v30, 0.0 }
 0x219   : > { %v564_v8 = vpack.c.bf16 %v563_v9, %v563_v9  ;;  %v895_v32 = vpack.c.bf16 %v894_v31, %v894_v31 }
 0x21b   : > { %565 = vst.msk [vmem:[%s222_s13] sm:$0x3] %vm500_vm4, %v564_v8  ;;  %1411 = vst.msk [vmem:[%s222_s13 + $0x2] sm:$0x3] %vm500_vm4, %v895_v32 }
 0x228   : > { %v836_v35 = vpop.xlane.xlu1 %835 }
 0x229   : > { %v837_v40 = vadd.f32 %v836_v35, %v505_v17 }
 0x22c   : > { %v841_v36 = vpop.xlane.xlu1 %840 }
 0x22d   : > { %v842_v28 = vadd.f32 %v841_v36, %v510_v34 }
 0x24a   : > { %v1168_v38 = vpop.xlane.xlu1 %1167 }
 0x24b   : > { %v1169_v42 = vadd.f32 %v1168_v38, %v837_v40 }
 0x24e   : > { %v1173_v41 = vpop.xlane.xlu1 %1172 }
 0x24f   : > { %v1174_v43 = vadd.f32 %v1173_v41, %v842_v28 }
 0x251   : > { %v1231_v46 = vsel %vm1230_vm5, %v1169_v42, %v1174_v43 }
 0x252   : > { %1233 = vst.msk [vmem:[%s227_s19] sm:$0xf] %vm1232_vm6, %v1231_v46  ;;  %v1223_v47 = vpop.permute.xlu1 %1222 }
 0x253   : > { %v1225_v49 = vmax.f32 %v1221_v44, %v1223_v47 }
 0x255   : > { %v1226_v24 = vmax.f32 %v1225_v49, 0.0 }
 0x257   : > { %v1227_v50 = vpack.c.bf16 %v1226_v24, %v1226_v24 }
 0x259   : > { %1443 = vst.msk [vmem:[%s222_s13 + $0x4] sm:$0x3] %vm500_vm4, %v1227_v50 }
 0x25a PF: > { %s15_s15 = sadd.s32 1, %s1706_s15  }
 0x25b   : > { %p12_p5 = scmp.ge.s32.totalorder %s15_s15, 5  }
 0x25d   :  { %14 = sbr.rel (!%p12_p5) target bundleno = 1 (0x1), region = 92 }

</bundles_post_ra>
